<compile_context>
chip_gen: v6e
topology: v6e:2x2x1
jax: 0.10.0
libtpu: 0.0.40
codegen_flags: <defaults>
</compile_context>

<pallas_src>
import jax
import jax.numpy as jnp
from jax.experimental import pallas as pl
from jax.experimental.pallas import tpu as pltpu

LATENT_DIM = 100
LATENT_PAD = 128   # lane-aligned K for layer 1
H1 = 256
H2 = 512
OUT = 784
OUT_PAD = 896      # 7 * 128 -> lane-dense output stores


def _round_up(n, m):
    return ((n + m - 1) // m) * m


def _generator_kernel(x_ref, w1_ref, b1_ref, w2_ref, b2_ref, w3_ref, b3_ref, o_ref):
    # Fused 3-layer MLP: bf16 matmuls on the MXU (f32 accumulation),
    # bias / ReLU / tanh in f32 on the VPU/EUP.
    x = x_ref[...]                                                    # (bm, 128) bf16
    h1 = jnp.dot(x, w1_ref[...], preferred_element_type=jnp.float32) + b1_ref[...]
    h1 = jnp.maximum(h1, 0.0)
    h2 = jnp.dot(h1.astype(jnp.bfloat16), w2_ref[...],
                 preferred_element_type=jnp.float32) + b2_ref[...]
    h2 = jnp.maximum(h2, 0.0)
    h3 = jnp.dot(h2.astype(jnp.bfloat16), w3_ref[...],
                 preferred_element_type=jnp.float32) + b3_ref[...]
    o_ref[...] = jnp.tanh(h3).astype(o_ref.dtype)


def generator_forward(x, params, *, bm=256):
    """x: (B, 100) float32 -> (B, 784) float32.

    params: (w1, b1, w2, b2, w3, b3) with w_i stored as (in_features, out_features)
    (i.e. transposed PyTorch weight) and b_i as (1, out_features), all float32.
    """
    w1, b1, w2, b2, w3, b3 = params
    B, D = x.shape
    assert D == LATENT_DIM

    # Batch tile: small batches -> one block; large batches -> bm-row tiles so the
    # "parallel" grid axis can be sharded across TensorCores (v7x megacore).
    bm_eff = bm if B >= bm else _round_up(B, 8)
    B_pad = _round_up(B, bm_eff)
    grid = (B_pad // bm_eff,)

    bf16 = jnp.bfloat16
    f32 = jnp.float32

    # Pad latent dim 100 -> 128 and batch -> B_pad; cast matmul LHS to bf16.
    x_p = jnp.zeros((B_pad, LATENT_PAD), bf16)
    x_p = x_p.at[:B, :LATENT_DIM].set(x.astype(bf16))

    # Weights as bf16 MXU operands; pad w1 rows (K) and w3/b3 columns (N).
    w1_p = jnp.zeros((LATENT_PAD, H1), bf16).at[:LATENT_DIM, :].set(w1.astype(bf16))
    w2_p = w2.astype(bf16)
    w3_p = jnp.zeros((H2, OUT_PAD), bf16).at[:, :OUT].set(w3.astype(bf16))
    b1_p = b1.astype(f32)
    b2_p = b2.astype(f32)
    b3_p = jnp.zeros((1, OUT_PAD), f32).at[:, :OUT].set(b3.astype(f32))

    out = pl.pallas_call(
        _generator_kernel,
        out_shape=jax.ShapeDtypeStruct((B_pad, OUT_PAD), f32),
        grid_spec=pltpu.PrefetchScalarGridSpec(
            num_scalar_prefetch=0,
            grid=grid,
            in_specs=[
                # batch tile of the (padded) latent input
                pl.BlockSpec((bm_eff, LATENT_PAD), lambda i: (i, 0)),
                # weights / biases: full arrays, same block every grid step
                pl.BlockSpec((LATENT_PAD, H1), lambda i: (0, 0)),
                pl.BlockSpec((1, H1), lambda i: (0, 0)),
                pl.BlockSpec((H1, H2), lambda i: (0, 0)),
                pl.BlockSpec((1, H2), lambda i: (0, 0)),
                pl.BlockSpec((H2, OUT_PAD), lambda i: (0, 0)),
                pl.BlockSpec((1, OUT_PAD), lambda i: (0, 0)),
            ],
            out_specs=pl.BlockSpec((bm_eff, OUT_PAD), lambda i: (i, 0)),
        ),
        compiler_params=pltpu.CompilerParams(
            dimension_semantics=("parallel",),
        ),
    )(x_p, w1_p, b1_p, w2_p, b2_p, w3_p, b3_p)

    # Slice away batch / output-feature padding.
    return out[:B, :OUT]


def init_params(key):
    """Deterministic synthetic parameters with the same shapes as the PyTorch module."""
    ks = jax.random.split(key, 6)

    def lin(kw, kb, fan_in, fan_out):
        bound = 1.0 / jnp.sqrt(fan_in)
        w = jax.random.uniform(kw, (fan_in, fan_out), jnp.float32, -bound, bound)
        b = jax.random.uniform(kb, (1, fan_out), jnp.float32, -bound, bound)
        return w, b

    w1, b1 = lin(ks[0], ks[1], LATENT_DIM, H1)
    w2, b2 = lin(ks[2], ks[3], H1, H2)
    w3, b3 = lin(ks[4], ks[5], H2, OUT)
    return (w1, b1, w2, b2, w3, b3)


def generator_reference(x, params):
    """Pure-JAX f32 reference of the PyTorch forward."""
    w1, b1, w2, b2, w3, b3 = params
    h = jnp.maximum(x @ w1 + b1, 0.0)
    h = jnp.maximum(h @ w2 + b2, 0.0)
    return jnp.tanh(h @ w3 + b3)


if __name__ == "__main__":
    key = jax.random.PRNGKey(0)
    k_params, k_x1, k_x2 = jax.random.split(key, 3)
    params = init_params(k_params)

    # Small batch: single-block path.
    B = 16
    x = jax.random.normal(k_x1, (B, LATENT_DIM), jnp.float32)
    out = jax.block_until_ready(generator_forward(x, params))
    ref = generator_reference(x, params)
    assert out.shape == (B, OUT), out.shape
    # bf16 MXU operands -> loosened tolerance vs f32 reference (tanh output in [-1,1]).
    assert jnp.allclose(out, ref, atol=2e-2, rtol=2e-2), "mismatch vs reference (small batch)"

    # Non-multiple batch exercising the tiled (grid>1) + batch-padding path.
    B2 = 300
    x2 = jax.random.normal(k_x2, (B2, LATENT_DIM), jnp.float32)
    out2 = jax.block_until_ready(generator_forward(x2, params, bm=128))
    ref2 = generator_reference(x2, params)
    assert out2.shape == (B2, OUT), out2.shape
    assert jnp.allclose(out2, ref2, atol=2e-2, rtol=2e-2), "mismatch vs reference (tiled batch)"

    print("KERNEL_OK")
</pallas_src>

<mosaic_0001>
module attributes {stable_mosaic.version = 11 : i64} {
  func.func @_generator_kernel(%arg0: i32, %arg1: memref<16x128xbf16, #tpu.memory_space<vmem>>, %arg2: memref<128x256xbf16, #tpu.memory_space<vmem>>, %arg3: memref<1x256xf32, #tpu.memory_space<vmem>>, %arg4: memref<256x512xbf16, #tpu.memory_space<vmem>>, %arg5: memref<1x512xf32, #tpu.memory_space<vmem>>, %arg6: memref<512x896xbf16, #tpu.memory_space<vmem>>, %arg7: memref<1x896xf32, #tpu.memory_space<vmem>>, %arg8: memref<16x896xf32, #tpu.memory_space<vmem>>) attributes {dimension_semantics = [#tpu.dimension_semantics<parallel>], iteration_bounds = array<i64: 1>, scalar_prefetch = 0 : i64, scratch_operands = 0 : i64, tpu.core_type = #tpu.core_type<tc>, window_params = [{transform_indices = @transform_0, window_bounds = array<i64: 16, 128>}, {pipeline_mode = #tpu.pipeline_mode<synchronous>, transform_indices = @transform_1, window_bounds = array<i64: 128, 256>}, {pipeline_mode = #tpu.pipeline_mode<synchronous>, transform_indices = @transform_2, window_bounds = array<i64: 1, 256>}, {pipeline_mode = #tpu.pipeline_mode<synchronous>, transform_indices = @transform_3, window_bounds = array<i64: 256, 512>}, {pipeline_mode = #tpu.pipeline_mode<synchronous>, transform_indices = @transform_4, window_bounds = array<i64: 1, 512>}, {pipeline_mode = #tpu.pipeline_mode<synchronous>, transform_indices = @transform_5, window_bounds = array<i64: 512, 896>}, {pipeline_mode = #tpu.pipeline_mode<synchronous>, transform_indices = @transform_6, window_bounds = array<i64: 1, 896>}, {transform_indices = @transform_7, window_bounds = array<i64: 16, 896>}]} {
    %c0 = arith.constant 0 : index
    %c0_0 = arith.constant 0 : index
    %0 = vector.load %arg1[%c0, %c0_0] : memref<16x128xbf16, #tpu.memory_space<vmem>>, vector<16x128xbf16>
    %c0_1 = arith.constant 0 : index
    %c0_2 = arith.constant 0 : index
    %1 = vector.load %arg2[%c0_1, %c0_2] : memref<128x256xbf16, #tpu.memory_space<vmem>>, vector<128x256xbf16>
    %cst = arith.constant dense<0.000000e+00> : vector<16x256xf32>
    %2 = tpu.matmul %0, %1, %cst {dimension_numbers = #tpu.dot_dimension_numbers<[1], [0], [0], [1], [0, 0, 1, 1], [], []>} : vector<16x128xbf16>, vector<128x256xbf16>, vector<16x256xf32> -> vector<16x256xf32>
    %c0_3 = arith.constant 0 : index
    %c0_4 = arith.constant 0 : index
    %3 = vector.load %arg3[%c0_3, %c0_4] : memref<1x256xf32, #tpu.memory_space<vmem>>, vector<1x256xf32>
    %4 = vector.broadcast %3 : vector<1x256xf32> to vector<16x256xf32>
    %5 = arith.addf %2, %4 : vector<16x256xf32>
    %cst_5 = arith.constant 0.000000e+00 : f32
    %6 = vector.broadcast %cst_5 : f32 to vector<16x256xf32>
    %7 = arith.maximumf %5, %6 : vector<16x256xf32>
    %8 = arith.truncf %7 : vector<16x256xf32> to vector<16x256xbf16>
    %c0_6 = arith.constant 0 : index
    %c0_7 = arith.constant 0 : index
    %9 = vector.load %arg4[%c0_6, %c0_7] : memref<256x512xbf16, #tpu.memory_space<vmem>>, vector<256x512xbf16>
    %cst_8 = arith.constant dense<0.000000e+00> : vector<16x512xf32>
    %10 = tpu.matmul %8, %9, %cst_8 {dimension_numbers = #tpu.dot_dimension_numbers<[1], [0], [0], [1], [0, 0, 1, 1], [], []>} : vector<16x256xbf16>, vector<256x512xbf16>, vector<16x512xf32> -> vector<16x512xf32>
    %c0_9 = arith.constant 0 : index
    %c0_10 = arith.constant 0 : index
    %11 = vector.load %arg5[%c0_9, %c0_10] : memref<1x512xf32, #tpu.memory_space<vmem>>, vector<1x512xf32>
    %12 = vector.broadcast %11 : vector<1x512xf32> to vector<16x512xf32>
    %13 = arith.addf %10, %12 : vector<16x512xf32>
    %cst_11 = arith.constant 0.000000e+00 : f32
    %14 = vector.broadcast %cst_11 : f32 to vector<16x512xf32>
    %15 = arith.maximumf %13, %14 : vector<16x512xf32>
    %16 = arith.truncf %15 : vector<16x512xf32> to vector<16x512xbf16>
    %c0_12 = arith.constant 0 : index
    %c0_13 = arith.constant 0 : index
    %17 = vector.load %arg6[%c0_12, %c0_13] : memref<512x896xbf16, #tpu.memory_space<vmem>>, vector<512x896xbf16>
    %cst_14 = arith.constant dense<0.000000e+00> : vector<16x896xf32>
    %18 = tpu.matmul %16, %17, %cst_14 {dimension_numbers = #tpu.dot_dimension_numbers<[1], [0], [0], [1], [0, 0, 1, 1], [], []>} : vector<16x512xbf16>, vector<512x896xbf16>, vector<16x896xf32> -> vector<16x896xf32>
    %c0_15 = arith.constant 0 : index
    %c0_16 = arith.constant 0 : index
    %19 = vector.load %arg7[%c0_15, %c0_16] : memref<1x896xf32, #tpu.memory_space<vmem>>, vector<1x896xf32>
    %20 = vector.broadcast %19 : vector<1x896xf32> to vector<16x896xf32>
    %21 = arith.addf %18, %20 : vector<16x896xf32>
    %22 = math.tanh %21 : vector<16x896xf32>
    %c0_17 = arith.constant 0 : index
    %c0_18 = arith.constant 0 : index
    %23 = vector.load %arg8[%c0_17, %c0_18] : memref<16x896xf32, #tpu.memory_space<vmem>>, vector<16x896xf32>
    tpu.vector_store %arg8[%c0_17, %c0_18], %22 {strides = array<i32>} : memref<16x896xf32, #tpu.memory_space<vmem>>, vector<16x896xf32>,
    return
  }
  func.func @transform_0(%arg0: i32) -> (i32, i32) {
    %c0_i32 = arith.constant 0 : i32
    %c0_i32_0 = arith.constant 0 : i32
    return %arg0, %c0_i32 : i32, i32
  }
  func.func @transform_1(%arg0: i32) -> (i32, i32) {
    %c0_i32 = arith.constant 0 : i32
    %c0_i32_0 = arith.constant 0 : i32
    %c0_i32_1 = arith.constant 0 : i32
    return %c0_i32, %c0_i32_0 : i32, i32
  }
  func.func @transform_2(%arg0: i32) -> (i32, i32) {
    %c0_i32 = arith.constant 0 : i32
    %c0_i32_0 = arith.constant 0 : i32
    %c0_i32_1 = arith.constant 0 : i32
    return %c0_i32, %c0_i32_0 : i32, i32
  }
  func.func @transform_3(%arg0: i32) -> (i32, i32) {
    %c0_i32 = arith.constant 0 : i32
    %c0_i32_0 = arith.constant 0 : i32
    %c0_i32_1 = arith.constant 0 : i32
    return %c0_i32, %c0_i32_0 : i32, i32
  }
  func.func @transform_4(%arg0: i32) -> (i32, i32) {
    %c0_i32 = arith.constant 0 : i32
    %c0_i32_0 = arith.constant 0 : i32
    %c0_i32_1 = arith.constant 0 : i32
    return %c0_i32, %c0_i32_0 : i32, i32
  }
  func.func @transform_5(%arg0: i32) -> (i32, i32) {
    %c0_i32 = arith.constant 0 : i32
    %c0_i32_0 = arith.constant 0 : i32
    %c0_i32_1 = arith.constant 0 : i32
    return %c0_i32, %c0_i32_0 : i32, i32
  }
  func.func @transform_6(%arg0: i32) -> (i32, i32) {
    %c0_i32 = arith.constant 0 : i32
    %c0_i32_0 = arith.constant 0 : i32
    %c0_i32_1 = arith.constant 0 : i32
    return %c0_i32, %c0_i32_0 : i32, i32
  }
  func.func @transform_7(%arg0: i32) -> (i32, i32) {
    %c0_i32 = arith.constant 0 : i32
    %c0_i32_0 = arith.constant 0 : i32
    return %arg0, %c0_i32 : i32, i32
  }
}

</mosaic_0001>

<bundles_post_ra>
// kernel: tpu_custom_call.1
= control target key start
LH: loop header
LB: loop body
LE: loop exit
PB: predicated region body
PF: predicated region fallthrough
CT: control target
= control target key end

     0   :  { %12 = vsyncpa [#allocation3], 0  ;;  %s3699_s0 = inlined_call_operand.hbm [shape: bf16[16,128], index: 0, kind: input, shape index: {}]   ;;  %s3700_s1 = inlined_call_operand.hbm [shape: bf16[128,256], index: 1, kind: input, shape index: {}]   ;;  %s3701_s2 = inlined_call_operand.vmem [shape: f32[1,256], index: 2, kind: input, shape index: {}]   ;;  %s3702_s3 = inlined_call_operand.hbm [shape: bf16[256,512], index: 3, kind: input, shape index: {}]   ;;  %s3703_s4 = inlined_call_operand.hbm [shape: f32[1,512], index: 4, kind: input, shape index: {}]   ;;  %s3704_s5 = inlined_call_operand.hbm [shape: bf16[512,896], index: 5, kind: input, shape index: {}]   ;;  %s3705_s6 = inlined_call_operand.vmem [shape: f32[1,896], index: 6, kind: input, shape index: {}]   ;;  %s3706_s7 = inlined_call_operand.hbm [shape: f32[16,896], index: 7, kind: output, shape index: {}]  }
   0x1   :  { %13 = vsyncpa [#allocation6], 0 }
   0x2   :  { %14 = vsyncpa [#allocation9], 0 }
   0x3   :  { %15 = vsyncpa [#allocation4], 0  ;;  %s3558_s24 = smov [#allocation5]  }
   0x4   :  { %s33_s25 = sshll.u32 %s3558_s24, 4  ;;  %s34_s25 = int_to_ptr.vmem [resolvable:$true] %s33_s25 }
   0x5   :  { %s3438_s26 = scalar_lea.vmem %s34_s25, 2048  ;;  %p3443_p1 = scmp.lt.s32.totalorder %s34_s25, %s34_s25 }
   0x6   :  { %p3439_p0 = scmp.ne.s32.totalorder %s34_s25, %s3438_s26  ;;  %p3444_p2 = scmp.lt.s32.totalorder %s3438_s26, %s3438_s26 }
   0x8   :  { %p3445_p3 = por %p3444_p2, %p3443_p1 }
   0xa   :  { %p3446_p4 = pnand %p3445_p3, %p3439_p0 }
   0xc   :  { %3449 = shalt.err (!%p3446_p4)
}
   0xd   :  { %s3559_s27 = smov 128   ;;  %s3560_s28 = smov 8  }
   0xe   :  { %39 = dma.hbm_to_vmem [thread:$0]  %s3700_s1, 2048, %s34_s25, [#allocation6], %s3559_s27, %s3559_s27, %s3560_s28  }
   0xf   :  { %s3561_s8 = smov [#allocation8]   ;;  %s3562_s10 = smov [#allocation2]  }
  0x10   :  { %s60_s9 = sshll.u32 %s3561_s8, 4  ;;  %s21_s11 = sshll.u32 %s3562_s10, 4  ;;  %s61_s9 = int_to_ptr.vmem [resolvable:$true] %s60_s9  ;;  %s22_s11 = int_to_ptr.vmem [resolvable:$true] %s21_s11 }
  0x11   :  { %s3458_s12 = scalar_lea.vmem %s61_s9, 64  ;;  %p3463_p6 = scmp.lt.s32.totalorder %s61_s9, %s61_s9 }
  0x12   :  { %p3459_p5 = scmp.ne.s32.totalorder %s61_s9, %s3458_s12  ;;  %p3464_p7 = scmp.lt.s32.totalorder %s3458_s12, %s3458_s12 }
  0x14   :  { %p3465_p8 = por %p3464_p7, %p3463_p6 }
  0x16   :  { %p3466_p9 = pnand %p3465_p8, %p3459_p5 }
  0x18   :  { %3469 = shalt.err (!%p3466_p9)
}
  0x19   :  { %63 = dma.hbm_to_vmem [thread:$0]  %s3703_s4, 64, %s61_s9, [#allocation9]  }
  0x1a   :  { %s3478_s15 = scalar_lea.vmem %s22_s11, 128  ;;  %p3483_p11 = scmp.lt.s32.totalorder %s22_s11, %s22_s11 }
  0x1b   :  { %p3479_p10 = scmp.ne.s32.totalorder %s22_s11, %s3478_s15  ;;  %p3484_p12 = scmp.lt.s32.totalorder %s3478_s15, %s3478_s15 }
  0x1d   :  { %p3485_p13 = por %p3484_p12, %p3483_p11 }
  0x1f   :  { %p3486_p0 = pnand %p3485_p13, %p3479_p10 }
  0x21   :  { %3489 = shalt.err (!%p3486_p0)
}
  0x22   :  { %s3563_s1 = smov 64   ;;  %s3564_s16 = smov 4  }
  0x23   :  { %27 = dma.hbm_to_vmem [thread:$0]  %s3699_s0, 128, %s22_s11, [#allocation3], %s3563_s1, %s3563_s1, %s3564_s16  }
  0x24   :  { %s3565_s19 = smov [#allocation7]  }
  0x25   :  { %s47_s20 = sshll.u32 %s3565_s19, 4  ;;  %s48_s20 = int_to_ptr.vmem [resolvable:$true] %s47_s20 }
  0x26   :  { %s3498_s21 = scalar_lea.vmem %s48_s20, 8192  ;;  %p3503_p2 = scmp.lt.s32.totalorder %s48_s20, %s48_s20 }
  0x27   :  { %p3499_p1 = scmp.ne.s32.totalorder %s48_s20, %s3498_s21  ;;  %p3504_p3 = scmp.lt.s32.totalorder %s3498_s21, %s3498_s21 }
  0x29   :  { %p3505_p4 = por %p3504_p3, %p3503_p2 }
  0x2b   :  { %p3506_p5 = pnand %p3505_p4, %p3499_p1 }
  0x2d   :  { %3509 = shalt.err (!%p3506_p5)
}
  0x2e   :  { %s3566_s4 = smov 256   ;;  %s3567_s22 = smov 16  }
  0x2f   :  { %53 = dma.hbm_to_vmem [thread:$0]  %s3702_s3, 8192, %s48_s20, [#allocation6], %s3566_s4, %s3566_s4, %s3567_s22  }
  0x30   :  { %s3568_s25 = smov [#allocation10]  }
  0x31   :  { %s69_s26 = sshll.u32 %s3568_s25, 4  ;;  %s70_s26 = int_to_ptr.vmem [resolvable:$true] %s69_s26 }
  0x32   :  { %s3518_s0 = scalar_lea.vmem %s70_s26, 28672  ;;  %p3523_p7 = scmp.lt.s32.totalorder %s70_s26, %s70_s26 }
  0x33   :  { %p3519_p6 = scmp.ne.s32.totalorder %s70_s26, %s3518_s0  ;;  %p3524_p8 = scmp.lt.s32.totalorder %s3518_s0, %s3518_s0 }
  0x35   :  { %p3525_p9 = por %p3524_p8, %p3523_p7 }
  0x37   :  { %p3526_p10 = pnand %p3525_p9, %p3519_p6 }
  0x39   :  { %3529 = shalt.err (!%p3526_p10)
}
  0x3a   :  { %s3569_s27 = smov 448   ;;  %s3570_s28 = smov 28  }
  0x3b   :  { %75 = dma.hbm_to_vmem [thread:$0]  %s3704_s5, 28672, %s70_s26, [#allocation9], %s3569_s27, %s3569_s27, %s3570_s28  }
  0x3c   :  { %3550 = dma.done.wait [#allocation3], 128  }
  0x3d   :  { %3551 = vsyncadd [#allocation3], 4294967168 }
  0x3e   :  { %3552 = dma.done.wait [#allocation6], 10240  }
  0x3f   :  { %3553 = vsyncadd [#allocation6], 4294957056 }
  0x40   :  { %3554 = dma.done.wait [#allocation9], 28736  }
  0x41   :  { %3555 = vsyncadd [#allocation9], 4294938560  ;;  %v3571_v0 = vmov 0   ;;  %v2961_v1 = vld [vmem:[#allocation5 + $0x74] ss:$8 sps:$4 sm:$0xff]  }
  0x42   :  { %242 = vmatprep.mubr.bf16.mxu0 %v3571_v0  ;;  %v2963_v2 = vld [vmem:[#allocation5 + $0x70] ss:$8 sps:$4 sm:$0xff]   ;;  %210 = vmatprep.subr.bf16.mxu0 %v2961_v1  ;;  %v2964_v3 = vld [vmem:[#allocation5 + $0x64] ss:$8 sps:$4 sm:$0xff]   ;;  %v2966_v4 = vld [vmem:[#allocation5 + $0x60] ss:$8 sps:$4 sm:$0xff]  }
  0x43   :  { %211 = vmatpush1.bf16.msra.mxu0 %v2963_v2  ;;  %v2967_v5 = vld [vmem:[#allocation5 + $0x54] ss:$8 sps:$4 sm:$0xff]   ;;  %v2969_v6 = vld [vmem:[#allocation5 + $0x50] ss:$8 sps:$4 sm:$0xff]   ;;  %v2970_v7 = vld [vmem:[#allocation5 + $0x44] ss:$8 sps:$4 sm:$0xff]  }
  0x44   :  { %212 = vmatprep.subr.bf16.mxu0 %v2964_v3  ;;  %v2972_v8 = vld [vmem:[#allocation5 + $0x40] ss:$8 sps:$4 sm:$0xff]   ;;  %v2973_v9 = vld [vmem:[#allocation5 + $0x34] ss:$8 sps:$4 sm:$0xff]   ;;  %v2975_v11 = vld [vmem:[#allocation5 + $0x30] ss:$8 sps:$4 sm:$0xff]  }
  0x45   :  { %v2986_v10 = vld [vmem:[#allocation7 + $0xe4] ss:$16 sps:$4 sm:$0xff]   ;;  %v2991_v12 = vld [vmem:[#allocation7 + $0xe0] ss:$16 sps:$4 sm:$0xff]   ;;  %v2990_v26 = vld [vmem:[#allocation7 + $0xec] ss:$16 sps:$4 sm:$0xff]  }
  0x46   :  { %665 = vmatprep.subr.bf16.mxu1 %v2986_v10  ;;  %v2992_v13 = vld [vmem:[#allocation7 + $0xc4] ss:$16 sps:$4 sm:$0xff]   ;;  %v2997_v15 = vld [vmem:[#allocation7 + $0xc0] ss:$16 sps:$4 sm:$0xff]   ;;  %v2985_v29 = vld [vmem:[#allocation2] sm:$0xff]  }
  0x47   :  { %213 = vmatpush1.bf16.msra.mxu0 %v2966_v4  ;;  %v2976_v14 = vld [vmem:[#allocation5 + $0x24] ss:$8 sps:$4 sm:$0xff]   ;;  %666 = vmatpush1.bf16.msra.mxu1 %v2991_v12  ;;  %v2978_v17 = vld [vmem:[#allocation5 + $0x20] ss:$8 sps:$4 sm:$0xff]   ;;  %v2979_v18 = vld [vmem:[#allocation5 + $0x14] ss:$8 sps:$4 sm:$0xff]  }
  0x48   :  { %214 = vmatprep.subr.bf16.mxu0 %v2967_v5  ;;  %667 = vmatprep.subr.bf16.mxu1 %v2992_v13  ;;  %v2998_v16 = vld [vmem:[#allocation7 + $0xa4] ss:$16 sps:$4 sm:$0xff]   ;;  %v3003_v19 = vld [vmem:[#allocation7 + $0xa0] ss:$16 sps:$4 sm:$0xff]   ;;  %v2988_v30 = vld [vmem:[#allocation7 + $0xe8] ss:$16 sps:$4 sm:$0xff]  }
  0x49   :  { %v3004_v20 = vld [vmem:[#allocation7 + $0x84] ss:$16 sps:$4 sm:$0xff]   ;;  %v2981_v21 = vld [vmem:[#allocation5 + $0x10] ss:$8 sps:$4 sm:$0xff]   ;;  %v2984_v25 = vld [vmem:[#allocation5] ss:$8 sps:$4 sm:$0xff]  }
  0x4a   :  { %v2982_v22 = vld [vmem:[#allocation5 + $0x4] ss:$8 sps:$4 sm:$0xff]   ;;  %v3009_v23 = vld [vmem:[#allocation7 + $0x80] ss:$16 sps:$4 sm:$0xff]   ;;  %v2994_v34 = vld [vmem:[#allocation7 + $0xc8] ss:$16 sps:$4 sm:$0xff]  }
  0x4b   :  { %215 = vmatpush1.bf16.msra.mxu0 %v2969_v6  ;;  %668 = vmatpush1.bf16.msra.mxu1 %v2997_v15  ;;  %v3010_v24 = vld [vmem:[#allocation7 + $0x64] ss:$16 sps:$4 sm:$0xff]   ;;  %v3015_v27 = vld [vmem:[#allocation7 + $0x60] ss:$16 sps:$4 sm:$0xff]   ;;  %v2996_v31 = vld [vmem:[#allocation7 + $0xcc] ss:$16 sps:$4 sm:$0xff]  }
  0x4c   :  { %216 = vmatprep.subr.bf16.mxu0 %v2970_v7  ;;  %669 = vmatprep.subr.bf16.mxu1 %v2998_v16  ;;  %v3016_v28 = vld [vmem:[#allocation7 + $0x44] ss:$16 sps:$4 sm:$0xff]   ;;  %v3021_v32 = vld [vmem:[#allocation7 + $0x40] ss:$16 sps:$4 sm:$0xff]   ;;  %v3002_v35 = vld [vmem:[#allocation7 + $0xac] ss:$16 sps:$4 sm:$0xff]  }
  0x4d   :  { %v3022_v33 = vld [vmem:[#allocation7 + $0x24] ss:$16 sps:$4 sm:$0xff]   ;;  %v3027_v36 = vld [vmem:[#allocation7 + $0x20] ss:$16 sps:$4 sm:$0xff]   ;;  %v3000_v38 = vld [vmem:[#allocation7 + $0xa8] ss:$16 sps:$4 sm:$0xff]  }
  0x4e   :  { %v3028_v37 = vld [vmem:[#allocation7 + $0x4] ss:$16 sps:$4 sm:$0xff]   ;;  %v3008_v39 = vld [vmem:[#allocation7 + $0x8c] ss:$16 sps:$4 sm:$0xff]   ;;  %v3033_v40 = vld [vmem:[#allocation7] ss:$16 sps:$4 sm:$0xff]  }
  0x4f   :  { %217 = vmatpush1.bf16.msra.mxu0 %v2972_v8  ;;  %670 = vmatpush1.bf16.msra.mxu1 %v3003_v19  ;;  %v3034_v41 = vld [vmem:[#allocation7 + $0x1e4] ss:$16 sps:$4 sm:$0xff]   ;;  %v3006_v42 = vld [vmem:[#allocation7 + $0x88] ss:$16 sps:$4 sm:$0xff]   ;;  %v3014_v43 = vld [vmem:[#allocation7 + $0x6c] ss:$16 sps:$4 sm:$0xff]  }
  0x50   :  { %218 = vmatprep.subr.bf16.mxu0 %v2973_v9  ;;  %671 = vmatprep.subr.bf16.mxu1 %v3004_v20  ;;  %v3039_v44 = vld [vmem:[#allocation7 + $0x1e0] ss:$16 sps:$4 sm:$0xff]   ;;  %v3012_v45 = vld [vmem:[#allocation7 + $0x68] ss:$16 sps:$4 sm:$0xff]   ;;  %v3040_v46 = vld [vmem:[#allocation7 + $0x1c4] ss:$16 sps:$4 sm:$0xff]   ;;  %v114_v20 = vlaneseq }
  0x51   :  { %v3020_v47 = vld [vmem:[#allocation7 + $0x4c] ss:$16 sps:$4 sm:$0xff]   ;;  %v3045_v48 = vld [vmem:[#allocation7 + $0x1c0] ss:$16 sps:$4 sm:$0xff]   ;;  %v3046_v49 = vld [vmem:[#allocation7 + $0x1a4] ss:$16 sps:$4 sm:$0xff]  }
  0x52   :  { %v3018_v50 = vld [vmem:[#allocation7 + $0x48] ss:$16 sps:$4 sm:$0xff]   ;;  %v3026_v51 = vld [vmem:[#allocation7 + $0x2c] ss:$16 sps:$4 sm:$0xff]   ;;  %v3051_v52 = vld [vmem:[#allocation7 + $0x1a0] ss:$16 sps:$4 sm:$0xff]  }
  0x53   :  { %219 = vmatpush1.bf16.msra.mxu0 %v2975_v11  ;;  %672 = vmatpush1.bf16.msra.mxu1 %v3009_v23  ;;  %v3052_v53 = vld [vmem:[#allocation7 + $0x184] ss:$16 sps:$4 sm:$0xff]   ;;  %v3024_v54 = vld [vmem:[#allocation7 + $0x28] ss:$16 sps:$4 sm:$0xff]   ;;  %v3032_v55 = vld [vmem:[#allocation7 + $0xc] ss:$16 sps:$4 sm:$0xff]  }
  0x54   :  { %220 = vmatprep.subr.bf16.mxu0 %v2976_v14  ;;  %673 = vmatprep.subr.bf16.mxu1 %v3010_v24  ;;  %v3057_v56 = vld [vmem:[#allocation7 + $0x180] ss:$16 sps:$4 sm:$0xff]   ;;  %v3058_v57 = vld [vmem:[#allocation7 + $0x164] ss:$16 sps:$4 sm:$0xff]   ;;  %v3030_v58 = vld [vmem:[#allocation7 + $0x8] ss:$16 sps:$4 sm:$0xff]  }
  0x55   :  { %v3038_v59 = vld [vmem:[#allocation7 + $0x1ec] ss:$16 sps:$4 sm:$0xff]   ;;  %v3063_v60 = vld [vmem:[#allocation7 + $0x160] ss:$16 sps:$4 sm:$0xff]   ;;  %v3036_v61 = vld [vmem:[#allocation7 + $0x1e8] ss:$16 sps:$4 sm:$0xff]  }
  0x56   :  { %v3044_v62 = vld [vmem:[#allocation7 + $0x1cc] ss:$16 sps:$4 sm:$0xff]   ;;  %v3042_v63 = vld [vmem:[#allocation7 + $0x1c8] ss:$16 sps:$4 sm:$0xff]   ;;  %v3064_v6 = vld [vmem:[#allocation7 + $0x144] ss:$16 sps:$4 sm:$0xff]  }
  0x57   :  { %221 = vmatpush1.bf16.msra.mxu0 %v2978_v17  ;;  %674 = vmatpush1.bf16.msra.mxu1 %v3015_v27  ;;  %v3050_v0 = vld [vmem:[#allocation7 + $0x1ac] ss:$16 sps:$4 sm:$0xff]   ;;  %v3048_v1 = vld [vmem:[#allocation7 + $0x1a8] ss:$16 sps:$4 sm:$0xff]   ;;  %v3069_v9 = vld [vmem:[#allocation7 + $0x140] ss:$16 sps:$4 sm:$0xff]  }
  0x58   :  { %222 = vmatprep.subr.bf16.mxu0 %v2979_v18  ;;  %675 = vmatprep.subr.bf16.mxu1 %v3016_v28  ;;  %v3056_v2 = vld [vmem:[#allocation7 + $0x18c] ss:$16 sps:$4 sm:$0xff]   ;;  %v3054_v3 = vld [vmem:[#allocation7 + $0x188] ss:$16 sps:$4 sm:$0xff]   ;;  %v3070_v10 = vld [vmem:[#allocation7 + $0x124] ss:$16 sps:$4 sm:$0xff]  }
  0x59   :  { %v3062_v4 = vld [vmem:[#allocation7 + $0x16c] ss:$16 sps:$4 sm:$0xff]   ;;  %v3060_v5 = vld [vmem:[#allocation7 + $0x168] ss:$16 sps:$4 sm:$0xff]   ;;  %v3075_v13 = vld [vmem:[#allocation7 + $0x120] ss:$16 sps:$4 sm:$0xff]  }
  0x5a   :  { %v3068_v7 = vld [vmem:[#allocation7 + $0x14c] ss:$16 sps:$4 sm:$0xff]   ;;  %v3066_v8 = vld [vmem:[#allocation7 + $0x148] ss:$16 sps:$4 sm:$0xff]   ;;  %v3076_v14 = vld [vmem:[#allocation7 + $0x104] ss:$16 sps:$4 sm:$0xff]  }
  0x5b   :  { %223 = vmatpush1.bf16.msra.mxu0 %v2981_v21  ;;  %676 = vmatpush1.bf16.msra.mxu1 %v3021_v32  ;;  %v3074_v11 = vld [vmem:[#allocation7 + $0x12c] ss:$16 sps:$4 sm:$0xff]   ;;  %v3072_v12 = vld [vmem:[#allocation7 + $0x128] ss:$16 sps:$4 sm:$0xff]   ;;  %v3081_v17 = vld [vmem:[#allocation7 + $0x100] ss:$16 sps:$4 sm:$0xff]  }
  0x5c   :  { %224 = vmatprep.subr.bf16.mxu0 %v2982_v22  ;;  %677 = vmatprep.subr.bf16.mxu1 %v3022_v33  ;;  %v3080_v15 = vld [vmem:[#allocation7 + $0x10c] ss:$16 sps:$4 sm:$0xff]   ;;  %v3078_v16 = vld [vmem:[#allocation7 + $0x108] ss:$16 sps:$4 sm:$0xff]   ;;  %v3630_v21 = vshrl.u32 %v114_v20, 7 }
  0x5d   :  { %v3084_v18 = vld [vmem:[#allocation10 + $0x18c] ss:$28 sps:$4 sm:$0xff]   ;;  %v112_v24 = vld [vmem:[%s3701_s2] sm:$0x3]  ;;  %v3153_v20 = vld [vmem:[#allocation10 + $0x624] ss:$28 sps:$4 sm:$0xff]  }
  0x5e   :  { %v3087_v19 = vld [vmem:[#allocation10 + $0x50c] ss:$28 sps:$4 sm:$0xff]   ;;  %v3633_v22 = vsub.s32 1, %v3630_v21  ;;  %v3636_v23 = vsub.s32 0, %v3630_v21 }
  0x5f   :  { %225 = vmatpush1.bf16.msra.mxu0 %v2984_v25  ;;  %678 = vmatpush1.bf16.msra.mxu1 %v3027_v36 }
  0x60   :  { %708 = vmatprep.subr.bf16.mxu0 %v2990_v26  ;;  %679 = vmatprep.subr.bf16.mxu1 %v3028_v37  ;;  %v121_v26 = vrot.slane %v112_v24, %v3633_v22  ;;  %v117_v27 = vrot.slane %v112_v24, %v3636_v23  ;;  %v3148_v24 = vld [vmem:[#allocation10 + $0x2a0] ss:$28 sps:$4 sm:$0xff]  }
  0x62   :  { %243 = vmatmul.mubr.bf16.vlgmr.msra.gmra.mxu0 %v2985_v29 }
  0x63   :  { %709 = vmatpush1.bf16.msra.mxu0 %v2988_v30  ;;  %680 = vmatpush1.bf16.msra.mxu1 %v3033_v40  ;;  %v3082_v40 = vld [vmem:[#allocation10 + $0x188] ss:$28 sps:$4 sm:$0xff]  }
  0x64   :  { %710 = vmatprep.subr.bf16.mxu0 %v2996_v31  ;;  %681 = vmatprep.subr.bf16.mxu1 %v3034_v41  ;;  %v3085_v41 = vld [vmem:[#allocation10 + $0x508] ss:$28 sps:$4 sm:$0xff]  }
  0x67   :  { %711 = vmatpush1.bf16.msra.mxu0 %v2994_v34  ;;  %682 = vmatpush2.bf16.msra.mxu1 %v3039_v44  ;;  %v3093_v44 = vld [vmem:[#allocation10 + $0x4d4] ss:$28 sps:$4 sm:$0xff]  }
  0x68   :  { %712 = vmatprep.subr.bf16.mxu0 %v3002_v35  ;;  %683 = vmatprep.subr.bf16.mxu1 %v3040_v46  ;;  %v3091_v46 = vld [vmem:[#allocation10 + $0x4d0] ss:$28 sps:$4 sm:$0xff]  }
  0x6b   :  { %713 = vmatpush1.bf16.msra.mxu0 %v3000_v38  ;;  %684 = vmatpush2.bf16.msra.mxu1 %v3045_v48  ;;  %v3099_v48 = vld [vmem:[#allocation10 + $0x49c] ss:$28 sps:$4 sm:$0xff]  }
  0x6c   :  { %714 = vmatprep.subr.bf16.mxu0 %v3008_v39  ;;  %685 = vmatprep.subr.bf16.mxu1 %v3046_v49  ;;  %v3094_v49 = vld [vmem:[#allocation10 + $0x118] ss:$28 sps:$4 sm:$0xff]  }
  0x6f   :  { %715 = vmatpush1.bf16.msra.mxu0 %v3006_v42  ;;  %686 = vmatpush2.bf16.msra.mxu1 %v3051_v52  ;;  %v3105_v52 = vld [vmem:[#allocation10 + $0x464] ss:$28 sps:$4 sm:$0xff]  }
  0x70   :  { %716 = vmatprep.subr.bf16.mxu0 %v3014_v43  ;;  %687 = vmatprep.subr.bf16.mxu1 %v3052_v53  ;;  %v3090_v43 = vld [vmem:[#allocation10 + $0x154] ss:$28 sps:$4 sm:$0xff]   ;;  %v3100_v53 = vld [vmem:[#allocation10 + $0xe0] ss:$28 sps:$4 sm:$0xff]  }
  0x73   :  { %717 = vmatpush1.bf16.msra.mxu0 %v3012_v45  ;;  %688 = vmatpush2.bf16.msra.mxu1 %v3057_v56  ;;  %v3088_v45 = vld [vmem:[#allocation10 + $0x150] ss:$28 sps:$4 sm:$0xff]  }
  0x74   :  { %718 = vmatprep.subr.bf16.mxu0 %v3020_v47  ;;  %689 = vmatprep.subr.bf16.mxu1 %v3058_v57  ;;  %v3096_v47 = vld [vmem:[#allocation10 + $0x11c] ss:$28 sps:$4 sm:$0xff]   ;;  %v3111_v56 = vld [vmem:[#allocation10 + $0x42c] ss:$28 sps:$4 sm:$0xff]  }
  0x75   :  { %v3106_v57 = vld [vmem:[#allocation10 + $0xa8] ss:$28 sps:$4 sm:$0xff]  }
  0x77   :  { %719 = vmatpush1.bf16.msra.mxu0 %v3018_v50  ;;  %690 = vmatpush2.bf16.msra.mxu1 %v3063_v60  ;;  %v3097_v50 = vld [vmem:[#allocation10 + $0x498] ss:$28 sps:$4 sm:$0xff]  }
  0x78   :  { %720 = vmatprep.subr.bf16.mxu0 %v3026_v51  ;;  %691 = vmatprep.subr.bf16.mxu1 %v3064_v6  ;;  %v3102_v51 = vld [vmem:[#allocation10 + $0xe4] ss:$28 sps:$4 sm:$0xff]   ;;  %v3117_v60 = vld [vmem:[#allocation10 + $0x3f4] ss:$28 sps:$4 sm:$0xff]  }
  0x79   :  { %v3127_v6 = vld [vmem:[#allocation10 + $0x380] ss:$28 sps:$4 sm:$0xff]  }
  0x7b   :  { %721 = vmatpush1.bf16.msra.mxu0 %v3024_v54  ;;  %692 = vmatpush2.bf16.msra.mxu1 %v3069_v9  ;;  %v3103_v54 = vld [vmem:[#allocation10 + $0x460] ss:$28 sps:$4 sm:$0xff]   ;;  %v3130_v9 = vld [vmem:[#allocation10 + $0x348] ss:$28 sps:$4 sm:$0xff]  }
  0x7c   :  { %722 = vmatprep.subr.bf16.mxu0 %v3032_v55  ;;  %693 = vmatprep.subr.bf16.mxu1 %v3070_v10  ;;  %v3108_v55 = vld [vmem:[#allocation10 + $0xac] ss:$28 sps:$4 sm:$0xff]  }
  0x7d   :  { %v3133_v10 = vld [vmem:[#allocation10 + $0x6c8] ss:$28 sps:$4 sm:$0xff]  }
  0x7f   :  { %723 = vmatpush1.bf16.msra.mxu0 %v3030_v58  ;;  %694 = vmatpush2.bf16.msra.mxu1 %v3075_v13  ;;  %v3109_v58 = vld [vmem:[#allocation10 + $0x428] ss:$28 sps:$4 sm:$0xff]   ;;  %v3136_v13 = vld [vmem:[#allocation10 + $0x310] ss:$28 sps:$4 sm:$0xff]  }
  0x80   :  { %724 = vmatprep.subr.bf16.mxu0 %v3038_v59  ;;  %695 = vmatprep.subr.bf16.mxu1 %v3076_v14  ;;  %v3114_v59 = vld [vmem:[#allocation10 + $0x74] ss:$28 sps:$4 sm:$0xff]  }
  0x81   :  { %v3139_v14 = vld [vmem:[#allocation10 + $0x690] ss:$28 sps:$4 sm:$0xff]  }
  0x83   :  { %725 = vmatpush2.bf16.msra.mxu0 %v3036_v61  ;;  %696 = vmatpush2.bf16.msra.mxu1 %v3081_v17  ;;  %v3112_v61 = vld [vmem:[#allocation10 + $0x70] ss:$28 sps:$4 sm:$0xff]   ;;  %v3142_v17 = vld [vmem:[#allocation10 + $0x2d8] ss:$28 sps:$4 sm:$0xff]  }
  0x84   :  { %726 = vmatprep.subr.bf16.mxu0 %v3044_v62  ;;  %2208 = vmatprep.subr.bf16.mxu1 %v3084_v18  ;;  %v3115_v62 = vld [vmem:[#allocation10 + $0x3f0] ss:$28 sps:$4 sm:$0xff]   ;;  %v3145_v18 = vld [vmem:[#allocation10 + $0x658] ss:$28 sps:$4 sm:$0xff]  }
  0x87   :  { %727 = vmatpush2.bf16.msra.mxu0 %v3042_v63  ;;  %v3120_v63 = vld [vmem:[#allocation10 + $0x3c] ss:$28 sps:$4 sm:$0xff]  }
  0x88   :  { %728 = vmatprep.subr.bf16.mxu0 %v3050_v0  ;;  %v3123_v0 = vld [vmem:[#allocation10 + $0x3bc] ss:$28 sps:$4 sm:$0xff]  }
  0x8b   :  { %729 = vmatpush2.bf16.msra.mxu0 %v3048_v1  ;;  %v3118_v1 = vld [vmem:[#allocation10 + $0x38] ss:$28 sps:$4 sm:$0xff]  }
  0x8c   :  { %730 = vmatprep.subr.bf16.mxu0 %v3056_v2  ;;  %v3121_v2 = vld [vmem:[#allocation10 + $0x3b8] ss:$28 sps:$4 sm:$0xff]  }
  0x8f   :  { %731 = vmatpush2.bf16.msra.mxu0 %v3054_v3  ;;  %v3126_v3 = vld [vmem:[#allocation10 + $0x4] ss:$28 sps:$4 sm:$0xff]  }
  0x90   :  { %732 = vmatprep.subr.bf16.mxu0 %v3062_v4  ;;  %v3129_v4 = vld [vmem:[#allocation10 + $0x384] ss:$28 sps:$4 sm:$0xff]  }
  0x93   :  { %733 = vmatpush2.bf16.msra.mxu0 %v3060_v5  ;;  %v3124_v5 = vld [vmem:[#allocation10] ss:$28 sps:$4 sm:$0xff]  }
  0x94   :  { %734 = vmatprep.subr.bf16.mxu0 %v3068_v7  ;;  %v3132_v7 = vld [vmem:[#allocation10 + $0x34c] ss:$28 sps:$4 sm:$0xff]  }
  0x97   :  { %735 = vmatpush2.bf16.msra.mxu0 %v3066_v8  ;;  %v3135_v8 = vld [vmem:[#allocation10 + $0x6cc] ss:$28 sps:$4 sm:$0xff]  }
  0x98   :  { %736 = vmatprep.subr.bf16.mxu0 %v3074_v11  ;;  %v3138_v11 = vld [vmem:[#allocation10 + $0x314] ss:$28 sps:$4 sm:$0xff]  }
  0x9b   :  { %737 = vmatpush2.bf16.msra.mxu0 %v3072_v12  ;;  %v3141_v12 = vld [vmem:[#allocation10 + $0x694] ss:$28 sps:$4 sm:$0xff]  }
  0x9c   :  { %738 = vmatprep.subr.bf16.mxu0 %v3080_v15  ;;  %v3144_v15 = vld [vmem:[#allocation10 + $0x2dc] ss:$28 sps:$4 sm:$0xff]  }
  0x9f   :  { %739 = vmatpush2.bf16.msra.mxu0 %v3078_v16  ;;  %v3147_v16 = vld [vmem:[#allocation10 + $0x65c] ss:$28 sps:$4 sm:$0xff]  }
  0xa0   :  { %2251 = vmatprep.subr.bf16.mxu0 %v3087_v19  ;;  %v3150_v19 = vld [vmem:[#allocation10 + $0x2a4] ss:$28 sps:$4 sm:$0xff]  }
 0x122   :  { %v244_v25 = vpop.f32.mrf.mxu0 }
 0x123   :  { %v245_v32 = vadd.f32 %v244_v25, %v117_v27  ;;  %v3151_v25 = vld [vmem:[#allocation10 + $0x620] ss:$28 sps:$4 sm:$0xff]  }
 0x124   :  { %v246_v28 = vpop.f32.mrf.mxu0 }
 0x125   :  { %v247_v30 = vadd.f32 %v246_v28, %v121_v26  ;;  %v253_v38 = vmax.f32 %v245_v32, 0.0  ;;  %v3154_v28 = vld [vmem:[#allocation10 + $0x268] ss:$28 sps:$4 sm:$0xff]   ;;  %v3160_v32 = vld [vmem:[#allocation10 + $0x230] ss:$28 sps:$4 sm:$0xff]  }
 0x126   :  { %v248_v29 = vpop.f32.mrf.mxu0 }
 0x127   :  { %v249_v31 = vadd.f32 %v248_v29, %v117_v27  ;;  %v254_v36 = vmax.f32 %v247_v30, 0.0  ;;  %v3159_v27 = vld [vmem:[#allocation10 + $0x5ec] ss:$28 sps:$4 sm:$0xff]   ;;  %v3162_v30 = vld [vmem:[#allocation10 + $0x234] ss:$28 sps:$4 sm:$0xff]  }
 0x128   :  { %v250_v33 = vpop.f32.mrf.mxu0  ;;  %v3157_v29 = vld [vmem:[#allocation10 + $0x5e8] ss:$28 sps:$4 sm:$0xff]  }
 0x129   :  { %v251_v34 = vadd.f32 %v250_v33, %v121_v26  ;;  %v255_v35 = vmax.f32 %v249_v31, 0.0  ;;  %v3156_v26 = vld [vmem:[#allocation10 + $0x26c] ss:$28 sps:$4 sm:$0xff]   ;;  %v3165_v31 = vld [vmem:[#allocation10 + $0x5b4] ss:$28 sps:$4 sm:$0xff]  }
 0x12a   :  { %v3163_v33 = vld [vmem:[#allocation10 + $0x5b0] ss:$28 sps:$4 sm:$0xff]  }
 0x12b   :  { %v256_v37 = vmax.f32 %v251_v34, 0.0  ;;  %v257_v42 = vpack.c.bf16 %v255_v35, %v253_v38  ;;  %v3168_v34 = vld [vmem:[#allocation10 + $0x1fc] ss:$28 sps:$4 sm:$0xff]   ;;  %v3174_v38 = vld [vmem:[#allocation10 + $0x1c4] ss:$28 sps:$4 sm:$0xff]  }
 0x12c   :  { %v3171_v35 = vld [vmem:[#allocation10 + $0x57c] ss:$28 sps:$4 sm:$0xff]  }
 0x12d   :  { %v258_v39 = vpack.c.bf16 %v256_v37, %v254_v36  ;;  %v3166_v36 = vld [vmem:[#allocation10 + $0x1f8] ss:$28 sps:$4 sm:$0xff]  }
 0x12e   :  { %v3169_v37 = vld [vmem:[#allocation10 + $0x578] ss:$28 sps:$4 sm:$0xff]  }
 0x12f   :  { %697 = vmatprep.mubr.bf16.mxu1 %v258_v39  ;;  %740 = vmatprep.mubr.bf16.mxu0 %v258_v39  ;;  %v3177_v39 = vld [vmem:[#allocation10 + $0x544] ss:$28 sps:$4 sm:$0xff]  }
 0x130   :  { %698 = vmatmul.mubr.bf16.vlgmr.msra.gmra.mxu1 %v257_v42  ;;  %741 = vmatmul.mubr.bf16.vlgmr.msra.gmra.mxu0 %v257_v42  ;;  %v3180_v42 = vld [vmem:[#allocation10 + $0x194] ss:$28 sps:$4 sm:$0xff]  }
 0x131   :  { %2209 = vmatpush1.bf16.msra.mxu1 %v3082_v40  ;;  %2252 = vmatpush1.bf16.msra.mxu0 %v3085_v41  ;;  %v3172_v40 = vld [vmem:[#allocation10 + $0x1c0] ss:$28 sps:$4 sm:$0xff]  }
 0x132   :  { %2210 = vmatprep.subr.bf16.mxu1 %v3090_v43  ;;  %2253 = vmatprep.subr.bf16.mxu0 %v3093_v44  ;;  %v3175_v41 = vld [vmem:[#allocation10 + $0x540] ss:$28 sps:$4 sm:$0xff]   ;;  %v3183_v43 = vld [vmem:[#allocation10 + $0x514] ss:$28 sps:$4 sm:$0xff]   ;;  %v339_v44 = vsub.s32 3, %v3630_v21 }
 0x135   :  { %2211 = vmatpush1.bf16.msra.mxu1 %v3088_v45  ;;  %2254 = vmatpush1.bf16.msra.mxu0 %v3091_v46  ;;  %v335_v45 = vsub.s32 2, %v3630_v21  ;;  %v323_v46 = vld [vmem:[#allocation8] sm:$0xf] }
 0x136   :  { %2212 = vmatprep.subr.bf16.mxu1 %v3096_v47  ;;  %2255 = vmatprep.subr.bf16.mxu0 %v3099_v48 }
 0x139   :  { %2213 = vmatpush1.bf16.msra.mxu1 %v3094_v49  ;;  %2256 = vmatpush1.bf16.msra.mxu0 %v3097_v50  ;;  %v332_v49 = vrot.slane %v323_v46, %v3633_v22  ;;  %v340_v50 = vrot.slane %v323_v46, %v339_v44 }
 0x13a   :  { %2214 = vmatprep.subr.bf16.mxu1 %v3102_v51  ;;  %2257 = vmatprep.subr.bf16.mxu0 %v3105_v52  ;;  %v328_v51 = vrot.slane %v323_v46, %v3636_v23  ;;  %v336_v52 = vrot.slane %v323_v46, %v335_v45  ;;  %v3222_v46 = vld [vmem:[#allocation10 + $0xc] ss:$28 sps:$4 sm:$0xff]  }
 0x13d   :  { %2215 = vmatpush1.bf16.msra.mxu1 %v3100_v53  ;;  %2258 = vmatpush1.bf16.msra.mxu0 %v3103_v54 }
 0x13e   :  { %2216 = vmatprep.subr.bf16.mxu1 %v3108_v55  ;;  %2259 = vmatprep.subr.bf16.mxu0 %v3111_v56 }
 0x141   :  { %2217 = vmatpush1.bf16.msra.mxu1 %v3106_v57  ;;  %2260 = vmatpush1.bf16.msra.mxu0 %v3109_v58 }
 0x142   :  { %2218 = vmatprep.subr.bf16.mxu1 %v3114_v59  ;;  %2261 = vmatprep.subr.bf16.mxu0 %v3117_v60 }
 0x145   :  { %2219 = vmatpush1.bf16.msra.mxu1 %v3112_v61  ;;  %2262 = vmatpush1.bf16.msra.mxu0 %v3115_v62 }
 0x146   :  { %2220 = vmatprep.subr.bf16.mxu1 %v3120_v63  ;;  %2263 = vmatprep.subr.bf16.mxu0 %v3123_v0 }
 0x149   :  { %2221 = vmatpush1.bf16.msra.mxu1 %v3118_v1  ;;  %2264 = vmatpush1.bf16.msra.mxu0 %v3121_v2 }
 0x14a   :  { %2222 = vmatprep.subr.bf16.mxu1 %v3126_v3  ;;  %2265 = vmatprep.subr.bf16.mxu0 %v3129_v4 }
 0x14d   :  { %2223 = vmatpush1.bf16.msra.mxu1 %v3124_v5  ;;  %2266 = vmatpush1.bf16.msra.mxu0 %v3127_v6 }
 0x14e   :  { %2224 = vmatprep.subr.bf16.mxu1 %v3132_v7  ;;  %2267 = vmatprep.subr.bf16.mxu0 %v3135_v8 }
 0x151   :  { %2225 = vmatpush2.bf16.msra.mxu1 %v3130_v9  ;;  %2268 = vmatpush2.bf16.msra.mxu0 %v3133_v10 }
 0x152   :  { %2226 = vmatprep.subr.bf16.mxu1 %v3138_v11  ;;  %2269 = vmatprep.subr.bf16.mxu0 %v3141_v12 }
 0x155   :  { %2227 = vmatpush2.bf16.msra.mxu1 %v3136_v13  ;;  %2270 = vmatpush2.bf16.msra.mxu0 %v3139_v14  ;;  %v3178_v13 = vld [vmem:[#allocation10 + $0x190] ss:$28 sps:$4 sm:$0xff]  }
 0x156   :  { %2228 = vmatprep.subr.bf16.mxu1 %v3144_v15  ;;  %2271 = vmatprep.subr.bf16.mxu0 %v3147_v16  ;;  %v3181_v14 = vld [vmem:[#allocation10 + $0x510] ss:$28 sps:$4 sm:$0xff]  }
 0x159   :  { %2229 = vmatpush2.bf16.msra.mxu1 %v3142_v17  ;;  %2272 = vmatpush2.bf16.msra.mxu0 %v3145_v18  ;;  %v3186_v17 = vld [vmem:[#allocation10 + $0x15c] ss:$28 sps:$4 sm:$0xff]  }
 0x15a   :  { %2230 = vmatprep.subr.bf16.mxu1 %v3150_v19  ;;  %2273 = vmatprep.subr.bf16.mxu0 %v3153_v20  ;;  %v3189_v18 = vld [vmem:[#allocation10 + $0x4dc] ss:$28 sps:$4 sm:$0xff]  }
 0x15b   :  { %v3184_v19 = vld [vmem:[#allocation10 + $0x158] ss:$28 sps:$4 sm:$0xff]  }
 0x15c   :  { %v3187_v20 = vld [vmem:[#allocation10 + $0x4d8] ss:$28 sps:$4 sm:$0xff]  }
 0x15d   :  { %2231 = vmatpush2.bf16.msra.mxu1 %v3148_v24  ;;  %2274 = vmatpush2.bf16.msra.mxu0 %v3151_v25  ;;  %v3192_v24 = vld [vmem:[#allocation10 + $0x124] ss:$28 sps:$4 sm:$0xff]  }
 0x15e   :  { %2232 = vmatprep.subr.bf16.mxu1 %v3156_v26  ;;  %2275 = vmatprep.subr.bf16.mxu0 %v3159_v27  ;;  %v3195_v25 = vld [vmem:[#allocation10 + $0x4a4] ss:$28 sps:$4 sm:$0xff]  }
 0x15f   :  { %v3190_v26 = vld [vmem:[#allocation10 + $0x120] ss:$28 sps:$4 sm:$0xff]  }
 0x160   :  { %v3193_v27 = vld [vmem:[#allocation10 + $0x4a0] ss:$28 sps:$4 sm:$0xff]  }
 0x161   :  { %2233 = vmatpush2.bf16.msra.mxu1 %v3154_v28  ;;  %2276 = vmatpush2.bf16.msra.mxu0 %v3157_v29  ;;  %v3198_v28 = vld [vmem:[#allocation10 + $0xec] ss:$28 sps:$4 sm:$0xff]  }
 0x162   :  { %2234 = vmatprep.subr.bf16.mxu1 %v3162_v30  ;;  %2277 = vmatprep.subr.bf16.mxu0 %v3165_v31  ;;  %v3201_v29 = vld [vmem:[#allocation10 + $0x46c] ss:$28 sps:$4 sm:$0xff]  }
 0x163   :  { %v3196_v30 = vld [vmem:[#allocation10 + $0xe8] ss:$28 sps:$4 sm:$0xff]  }
 0x164   :  { %v3199_v31 = vld [vmem:[#allocation10 + $0x468] ss:$28 sps:$4 sm:$0xff]  }
 0x165   :  { %2235 = vmatpush2.bf16.msra.mxu1 %v3160_v32  ;;  %2278 = vmatpush2.bf16.msra.mxu0 %v3163_v33  ;;  %v3204_v32 = vld [vmem:[#allocation10 + $0xb4] ss:$28 sps:$4 sm:$0xff]  }
 0x166   :  { %2236 = vmatprep.subr.bf16.mxu1 %v3168_v34  ;;  %2279 = vmatprep.subr.bf16.mxu0 %v3171_v35  ;;  %v3207_v33 = vld [vmem:[#allocation10 + $0x434] ss:$28 sps:$4 sm:$0xff]  }
 0x167   :  { %v3202_v34 = vld [vmem:[#allocation10 + $0xb0] ss:$28 sps:$4 sm:$0xff]  }
 0x168   :  { %v3205_v35 = vld [vmem:[#allocation10 + $0x430] ss:$28 sps:$4 sm:$0xff]  }
 0x169   :  { %2237 = vmatpush2.bf16.msra.mxu1 %v3166_v36  ;;  %2280 = vmatpush2.bf16.msra.mxu0 %v3169_v37  ;;  %v3210_v36 = vld [vmem:[#allocation10 + $0x7c] ss:$28 sps:$4 sm:$0xff]  }
 0x16a   :  { %2238 = vmatprep.subr.bf16.mxu1 %v3174_v38  ;;  %2281 = vmatprep.subr.bf16.mxu0 %v3177_v39  ;;  %v3213_v37 = vld [vmem:[#allocation10 + $0x3fc] ss:$28 sps:$4 sm:$0xff]  }
 0x16b   :  { %v3208_v38 = vld [vmem:[#allocation10 + $0x78] ss:$28 sps:$4 sm:$0xff]  }
 0x16c   :  { %v3211_v39 = vld [vmem:[#allocation10 + $0x3f8] ss:$28 sps:$4 sm:$0xff]  }
 0x16d   :  { %2239 = vmatpush2.bf16.msra.mxu1 %v3172_v40  ;;  %2282 = vmatpush2.bf16.msra.mxu0 %v3175_v41  ;;  %v3216_v40 = vld [vmem:[#allocation10 + $0x44] ss:$28 sps:$4 sm:$0xff]  }
 0x16e   :  { %2294 = vmatprep.subr.bf16.mxu1 %v3180_v42  ;;  %2337 = vmatprep.subr.bf16.mxu0 %v3183_v43  ;;  %v3219_v41 = vld [vmem:[#allocation10 + $0x3c4] ss:$28 sps:$4 sm:$0xff]  }
 0x16f   :  { %v3214_v42 = vld [vmem:[#allocation10 + $0x40] ss:$28 sps:$4 sm:$0xff]  }
 0x170   :  { %v3217_v43 = vld [vmem:[#allocation10 + $0x3c0] ss:$28 sps:$4 sm:$0xff]  }
 0x1f0   :  { %v699_v47 = vpop.f32.mrf.mxu1  ;;  %v742_v48 = vpop.f32.mrf.mxu0 }
 0x1f1   :  { %v700_v61 = vadd.f32 %v699_v47, %v328_v51  ;;  %v743_v62 = vadd.f32 %v742_v48, %v336_v52  ;;  %v3225_v47 = vld [vmem:[#allocation10 + $0x38c] ss:$28 sps:$4 sm:$0xff]  }
 0x1f2   :  { %v701_v53 = vpop.f32.mrf.mxu1  ;;  %v744_v54 = vpop.f32.mrf.mxu0  ;;  %v3220_v48 = vld [vmem:[#allocation10 + $0x8] ss:$28 sps:$4 sm:$0xff]  }
 0x1f3   :  { %v702_v57 = vadd.f32 %v701_v53, %v332_v49  ;;  %v745_v58 = vadd.f32 %v744_v54, %v340_v50  ;;  %v751_v9 = vmax.f32 %v700_v61, 0.0  ;;  %v753_v10 = vmax.f32 %v743_v62, 0.0  ;;  %v3229_v53 = vld [vmem:[#allocation10 + $0x6d0] ss:$28 sps:$4 sm:$0xff]   ;;  %v3234_v54 = vld [vmem:[#allocation10 + $0x31c] ss:$28 sps:$4 sm:$0xff]  }
 0x1f4   :  { %v703_v55 = vpop.f32.mrf.mxu1  ;;  %v746_v56 = vpop.f32.mrf.mxu0  ;;  %v3241_v61 = vld [vmem:[#allocation10 + $0x660] ss:$28 sps:$4 sm:$0xff]   ;;  %v3246_v62 = vld [vmem:[#allocation10 + $0x2ac] ss:$28 sps:$4 sm:$0xff]  }
 0x1f5   :  { %v704_v59 = vadd.f32 %v703_v55, %v328_v51  ;;  %v747_v60 = vadd.f32 %v746_v56, %v336_v52  ;;  %v752_v5 = vmax.f32 %v702_v57, 0.0  ;;  %v754_v6 = vmax.f32 %v745_v58, 0.0  ;;  %v3231_v51 = vld [vmem:[#allocation10 + $0x6d4] ss:$28 sps:$4 sm:$0xff]   ;;  %v3237_v55 = vld [vmem:[#allocation10 + $0x69c] ss:$28 sps:$4 sm:$0xff]  }
 0x1f6   :  { %v705_v63 = vpop.f32.mrf.mxu1  ;;  %v748_v0 = vpop.f32.mrf.mxu0  ;;  %v3226_v52 = vld [vmem:[#allocation10 + $0x350] ss:$28 sps:$4 sm:$0xff]   ;;  %v3232_v56 = vld [vmem:[#allocation10 + $0x318] ss:$28 sps:$4 sm:$0xff]   ;;  %v3240_v58 = vld [vmem:[#allocation10 + $0x2e4] ss:$28 sps:$4 sm:$0xff]  }
 0x1f7   :  { %v706_v1 = vadd.f32 %v705_v63, %v332_v49  ;;  %v749_v2 = vadd.f32 %v748_v0, %v340_v50  ;;  %v755_v3 = vmax.f32 %v704_v59, 0.0  ;;  %v757_v4 = vmax.f32 %v747_v60, 0.0  ;;  %v3223_v49 = vld [vmem:[#allocation10 + $0x388] ss:$28 sps:$4 sm:$0xff]   ;;  %v3228_v50 = vld [vmem:[#allocation10 + $0x354] ss:$28 sps:$4 sm:$0xff]  }
 0x1f8   :  { %v3235_v57 = vld [vmem:[#allocation10 + $0x698] ss:$28 sps:$4 sm:$0xff]   ;;  %v3243_v59 = vld [vmem:[#allocation10 + $0x664] ss:$28 sps:$4 sm:$0xff]   ;;  %v3249_v63 = vld [vmem:[#allocation10 + $0x62c] ss:$28 sps:$4 sm:$0xff]  }
 0x1f9   :  { %v756_v7 = vmax.f32 %v706_v1, 0.0  ;;  %v758_v8 = vmax.f32 %v749_v2, 0.0  ;;  %v3655_v15 = vpack.c.bf16 %v755_v3, %v751_v9  ;;  %v3657_v16 = vpack.c.bf16 %v757_v4, %v753_v10  ;;  %v3238_v60 = vld [vmem:[#allocation10 + $0x2e0] ss:$28 sps:$4 sm:$0xff]   ;;  %v3244_v0 = vld [vmem:[#allocation10 + $0x2a8] ss:$28 sps:$4 sm:$0xff]  }
 0x1fa   :  { %v3247_v1 = vld [vmem:[#allocation10 + $0x628] ss:$28 sps:$4 sm:$0xff]   ;;  %v3252_v2 = vld [vmem:[#allocation10 + $0x274] ss:$28 sps:$4 sm:$0xff]  }
 0x1fb   :  { %v3651_v11 = vpack.c.bf16 %v756_v7, %v752_v5  ;;  %v3653_v12 = vpack.c.bf16 %v758_v8, %v754_v6  ;;  %v3255_v3 = vld [vmem:[#allocation10 + $0x5f4] ss:$28 sps:$4 sm:$0xff]   ;;  %v3258_v6 = vld [vmem:[#allocation10 + $0x23c] ss:$28 sps:$4 sm:$0xff]   ;;  %v3264_v10 = vld [vmem:[#allocation10 + $0x204] ss:$28 sps:$4 sm:$0xff]  }
 0x1fc   :  { %v3250_v4 = vld [vmem:[#allocation10 + $0x270] ss:$28 sps:$4 sm:$0xff]   ;;  %v3261_v7 = vld [vmem:[#allocation10 + $0x5bc] ss:$28 sps:$4 sm:$0xff]  }
 0x1fd   :  { %2240 = vmatprep.mubr.bf16.mxu1 %v3651_v11  ;;  %2283 = vmatprep.mubr.bf16.mxu0 %v3653_v12  ;;  %v3253_v5 = vld [vmem:[#allocation10 + $0x5f0] ss:$28 sps:$4 sm:$0xff]   ;;  %v3256_v8 = vld [vmem:[#allocation10 + $0x238] ss:$28 sps:$4 sm:$0xff]  }
 0x1fe   :  { %2241 = vmatmul.mubr.bf16.vlgmr.msra.gmra.mxu1 %v3655_v15  ;;  %2284 = vmatmul.mubr.bf16.vlgmr.msra.gmra.mxu0 %v3657_v16  ;;  %v3259_v9 = vld [vmem:[#allocation10 + $0x5b8] ss:$28 sps:$4 sm:$0xff]  }
 0x1ff   :  { %2295 = vmatpush1.bf16.msra.mxu1 %v3178_v13  ;;  %2338 = vmatpush1.bf16.msra.mxu0 %v3181_v14  ;;  %v3267_v13 = vld [vmem:[#allocation10 + $0x584] ss:$28 sps:$4 sm:$0xff]  }
 0x200   :  { %2326 = vmatprep.mubr.bf16.mxu1 %v3651_v11  ;;  %2369 = vmatprep.mubr.bf16.mxu0 %v3653_v12  ;;  %v3262_v14 = vld [vmem:[#allocation10 + $0x200] ss:$28 sps:$4 sm:$0xff]  }
 0x201   :  { %2296 = vmatprep.subr.bf16.mxu1 %v3186_v17  ;;  %2339 = vmatprep.subr.bf16.mxu0 %v3189_v18  ;;  %v3265_v17 = vld [vmem:[#allocation10 + $0x580] ss:$28 sps:$4 sm:$0xff]   ;;  %v3270_v18 = vld [vmem:[#allocation10 + $0x1cc] ss:$28 sps:$4 sm:$0xff]  }
 0x203   :  { %2297 = vmatpush1.bf16.msra.mxu1 %v3184_v19  ;;  %2340 = vmatpush1.bf16.msra.mxu0 %v3187_v20  ;;  %v3273_v19 = vld [vmem:[#allocation10 + $0x54c] ss:$28 sps:$4 sm:$0xff]  }
 0x204   :  { %2298 = vmatprep.subr.bf16.mxu1 %v3192_v24  ;;  %2341 = vmatprep.subr.bf16.mxu0 %v3195_v25  ;;  %v3268_v20 = vld [vmem:[#allocation10 + $0x1c8] ss:$28 sps:$4 sm:$0xff]   ;;  %v3276_v25 = vld [vmem:[#allocation10 + $0x19c] ss:$28 sps:$4 sm:$0xff]  }
 0x205   :  { %v3271_v24 = vld [vmem:[#allocation10 + $0x548] ss:$28 sps:$4 sm:$0xff]  }
 0x207   :  { %2299 = vmatpush1.bf16.msra.mxu1 %v3190_v26  ;;  %2342 = vmatpush1.bf16.msra.mxu0 %v3193_v27  ;;  %v3279_v26 = vld [vmem:[#allocation10 + $0x51c] ss:$28 sps:$4 sm:$0xff]  }
 0x208   :  { %2300 = vmatprep.subr.bf16.mxu1 %v3198_v28  ;;  %2343 = vmatprep.subr.bf16.mxu0 %v3201_v29  ;;  %v3274_v27 = vld [vmem:[#allocation10 + $0x198] ss:$28 sps:$4 sm:$0xff]   ;;  %v3282_v29 = vld [vmem:[#allocation10 + $0x164] ss:$28 sps:$4 sm:$0xff]  }
 0x209   :  { %v3277_v28 = vld [vmem:[#allocation10 + $0x518] ss:$28 sps:$4 sm:$0xff]  }
 0x20b   :  { %2301 = vmatpush1.bf16.msra.mxu1 %v3196_v30  ;;  %2344 = vmatpush1.bf16.msra.mxu0 %v3199_v31  ;;  %v3285_v30 = vld [vmem:[#allocation10 + $0x4e4] ss:$28 sps:$4 sm:$0xff]  }
 0x20c   :  { %2302 = vmatprep.subr.bf16.mxu1 %v3204_v32  ;;  %2345 = vmatprep.subr.bf16.mxu0 %v3207_v33  ;;  %v3280_v31 = vld [vmem:[#allocation10 + $0x160] ss:$28 sps:$4 sm:$0xff]   ;;  %v3288_v33 = vld [vmem:[#allocation10 + $0x12c] ss:$28 sps:$4 sm:$0xff]  }
 0x20d   :  { %v3283_v32 = vld [vmem:[#allocation10 + $0x4e0] ss:$28 sps:$4 sm:$0xff]  }
 0x20f   :  { %2303 = vmatpush1.bf16.msra.mxu1 %v3202_v34  ;;  %2346 = vmatpush1.bf16.msra.mxu0 %v3205_v35  ;;  %v3291_v34 = vld [vmem:[#allocation10 + $0x4ac] ss:$28 sps:$4 sm:$0xff]  }
 0x210   :  { %2304 = vmatprep.subr.bf16.mxu1 %v3210_v36  ;;  %2347 = vmatprep.subr.bf16.mxu0 %v3213_v37  ;;  %v3286_v35 = vld [vmem:[#allocation10 + $0x128] ss:$28 sps:$4 sm:$0xff]   ;;  %v3294_v37 = vld [vmem:[#allocation10 + $0xf4] ss:$28 sps:$4 sm:$0xff]  }
 0x211   :  { %v3289_v36 = vld [vmem:[#allocation10 + $0x4a8] ss:$28 sps:$4 sm:$0xff]  }
 0x213   :  { %2305 = vmatpush1.bf16.msra.mxu1 %v3208_v38  ;;  %2348 = vmatpush1.bf16.msra.mxu0 %v3211_v39  ;;  %v3297_v38 = vld [vmem:[#allocation10 + $0x474] ss:$28 sps:$4 sm:$0xff]  }
 0x214   :  { %2306 = vmatprep.subr.bf16.mxu1 %v3216_v40  ;;  %2349 = vmatprep.subr.bf16.mxu0 %v3219_v41  ;;  %v3292_v39 = vld [vmem:[#allocation10 + $0xf0] ss:$28 sps:$4 sm:$0xff]   ;;  %v3300_v41 = vld [vmem:[#allocation10 + $0xbc] ss:$28 sps:$4 sm:$0xff]  }
 0x215   :  { %v3295_v40 = vld [vmem:[#allocation10 + $0x470] ss:$28 sps:$4 sm:$0xff]  }
 0x217   :  { %2307 = vmatpush1.bf16.msra.mxu1 %v3214_v42  ;;  %2350 = vmatpush1.bf16.msra.mxu0 %v3217_v43  ;;  %v3303_v42 = vld [vmem:[#allocation10 + $0x43c] ss:$28 sps:$4 sm:$0xff]  }
 0x218   :  { %2308 = vmatprep.subr.bf16.mxu1 %v3222_v46  ;;  %2351 = vmatprep.subr.bf16.mxu0 %v3225_v47  ;;  %v3298_v43 = vld [vmem:[#allocation10 + $0xb8] ss:$28 sps:$4 sm:$0xff]   ;;  %v3306_v47 = vld [vmem:[#allocation10 + $0x84] ss:$28 sps:$4 sm:$0xff]  }
 0x219   :  { %v3301_v46 = vld [vmem:[#allocation10 + $0x438] ss:$28 sps:$4 sm:$0xff]  }
 0x21b   :  { %2309 = vmatpush1.bf16.msra.mxu1 %v3220_v48  ;;  %2352 = vmatpush1.bf16.msra.mxu0 %v3223_v49  ;;  %v3309_v48 = vld [vmem:[#allocation10 + $0x404] ss:$28 sps:$4 sm:$0xff]  }
 0x21c   :  { %2310 = vmatprep.subr.bf16.mxu1 %v3228_v50  ;;  %2353 = vmatprep.subr.bf16.mxu0 %v3231_v51  ;;  %v3304_v49 = vld [vmem:[#allocation10 + $0x80] ss:$28 sps:$4 sm:$0xff]   ;;  %v3312_v51 = vld [vmem:[#allocation10 + $0x4c] ss:$28 sps:$4 sm:$0xff]  }
 0x21d   :  { %v3307_v50 = vld [vmem:[#allocation10 + $0x400] ss:$28 sps:$4 sm:$0xff]  }
 0x21f   :  { %2311 = vmatpush2.bf16.msra.mxu1 %v3226_v52  ;;  %2354 = vmatpush2.bf16.msra.mxu0 %v3229_v53  ;;  %v3315_v52 = vld [vmem:[#allocation10 + $0x3cc] ss:$28 sps:$4 sm:$0xff]  }
 0x220   :  { %2312 = vmatprep.subr.bf16.mxu1 %v3234_v54  ;;  %2355 = vmatprep.subr.bf16.mxu0 %v3237_v55  ;;  %v3310_v53 = vld [vmem:[#allocation10 + $0x48] ss:$28 sps:$4 sm:$0xff]   ;;  %v3318_v55 = vld [vmem:[#allocation10 + $0x14] ss:$28 sps:$4 sm:$0xff]  }
 0x221   :  { %v3313_v54 = vld [vmem:[#allocation10 + $0x3c8] ss:$28 sps:$4 sm:$0xff]  }
 0x223   :  { %2313 = vmatpush2.bf16.msra.mxu1 %v3232_v56  ;;  %2356 = vmatpush2.bf16.msra.mxu0 %v3235_v57  ;;  %v3321_v56 = vld [vmem:[#allocation10 + $0x394] ss:$28 sps:$4 sm:$0xff]  }
 0x224   :  { %2314 = vmatprep.subr.bf16.mxu1 %v3240_v58  ;;  %2357 = vmatprep.subr.bf16.mxu0 %v3243_v59  ;;  %v3316_v57 = vld [vmem:[#allocation10 + $0x10] ss:$28 sps:$4 sm:$0xff]   ;;  %v3324_v59 = vld [vmem:[#allocation10 + $0x35c] ss:$28 sps:$4 sm:$0xff]  }
 0x225   :  { %v3319_v58 = vld [vmem:[#allocation10 + $0x390] ss:$28 sps:$4 sm:$0xff]  }
 0x227   :  { %2315 = vmatpush2.bf16.msra.mxu1 %v3238_v60  ;;  %2358 = vmatpush2.bf16.msra.mxu0 %v3241_v61  ;;  %v3327_v60 = vld [vmem:[#allocation10 + $0x6dc] ss:$28 sps:$4 sm:$0xff]  }
 0x228   :  { %2316 = vmatprep.subr.bf16.mxu1 %v3246_v62  ;;  %2359 = vmatprep.subr.bf16.mxu0 %v3249_v63  ;;  %v3322_v61 = vld [vmem:[#allocation10 + $0x358] ss:$28 sps:$4 sm:$0xff]   ;;  %v3330_v63 = vld [vmem:[#allocation10 + $0x324] ss:$28 sps:$4 sm:$0xff]  }
 0x229   :  { %v3325_v62 = vld [vmem:[#allocation10 + $0x6d8] ss:$28 sps:$4 sm:$0xff]  }
 0x22b   :  { %2317 = vmatpush2.bf16.msra.mxu1 %v3244_v0  ;;  %2360 = vmatpush2.bf16.msra.mxu0 %v3247_v1  ;;  %v3333_v0 = vld [vmem:[#allocation10 + $0x6a4] ss:$28 sps:$4 sm:$0xff]  }
 0x22c   :  { %2318 = vmatprep.subr.bf16.mxu1 %v3252_v2  ;;  %2361 = vmatprep.subr.bf16.mxu0 %v3255_v3  ;;  %v3328_v1 = vld [vmem:[#allocation10 + $0x320] ss:$28 sps:$4 sm:$0xff]   ;;  %v3336_v3 = vld [vmem:[#allocation10 + $0x2ec] ss:$28 sps:$4 sm:$0xff]  }
 0x22d   :  { %v3331_v2 = vld [vmem:[#allocation10 + $0x6a0] ss:$28 sps:$4 sm:$0xff]  }
 0x22f   :  { %2319 = vmatpush2.bf16.msra.mxu1 %v3250_v4  ;;  %2362 = vmatpush2.bf16.msra.mxu0 %v3253_v5  ;;  %v3339_v4 = vld [vmem:[#allocation10 + $0x66c] ss:$28 sps:$4 sm:$0xff]  }
 0x230   :  { %2320 = vmatprep.subr.bf16.mxu1 %v3258_v6  ;;  %2363 = vmatprep.subr.bf16.mxu0 %v3261_v7  ;;  %v3334_v5 = vld [vmem:[#allocation10 + $0x2e8] ss:$28 sps:$4 sm:$0xff]   ;;  %v3342_v7 = vld [vmem:[#allocation10 + $0x2b4] ss:$28 sps:$4 sm:$0xff]  }
 0x231   :  { %v3337_v6 = vld [vmem:[#allocation10 + $0x668] ss:$28 sps:$4 sm:$0xff]  }
 0x233   :  { %2321 = vmatpush2.bf16.msra.mxu1 %v3256_v8  ;;  %2364 = vmatpush2.bf16.msra.mxu0 %v3259_v9  ;;  %v3345_v8 = vld [vmem:[#allocation10 + $0x634] ss:$28 sps:$4 sm:$0xff]  }
 0x234   :  { %2322 = vmatprep.subr.bf16.mxu1 %v3264_v10  ;;  %2365 = vmatprep.subr.bf16.mxu0 %v3267_v13  ;;  %v3340_v9 = vld [vmem:[#allocation10 + $0x2b0] ss:$28 sps:$4 sm:$0xff]   ;;  %v3348_v13 = vld [vmem:[#allocation10 + $0x27c] ss:$28 sps:$4 sm:$0xff]  }
 0x235   :  { %v3343_v10 = vld [vmem:[#allocation10 + $0x630] ss:$28 sps:$4 sm:$0xff]  }
 0x237   :  { %2323 = vmatpush2.bf16.msra.mxu1 %v3262_v14  ;;  %2366 = vmatpush2.bf16.msra.mxu0 %v3265_v17  ;;  %v3351_v14 = vld [vmem:[#allocation10 + $0x5fc] ss:$28 sps:$4 sm:$0xff]  }
 0x238   :  { %2324 = vmatprep.subr.bf16.mxu1 %v3270_v18  ;;  %2367 = vmatprep.subr.bf16.mxu0 %v3273_v19  ;;  %v3346_v17 = vld [vmem:[#allocation10 + $0x278] ss:$28 sps:$4 sm:$0xff]   ;;  %v3354_v19 = vld [vmem:[#allocation10 + $0x244] ss:$28 sps:$4 sm:$0xff]  }
 0x239   :  { %v3349_v18 = vld [vmem:[#allocation10 + $0x5f8] ss:$28 sps:$4 sm:$0xff]  }
 0x23b   :  { %2325 = vmatpush2.bf16.msra.mxu1 %v3268_v20  ;;  %2368 = vmatpush2.bf16.msra.mxu0 %v3271_v24  ;;  %v3357_v20 = vld [vmem:[#allocation10 + $0x5c4] ss:$28 sps:$4 sm:$0xff]  }
 0x23c   :  { %2380 = vmatprep.subr.bf16.mxu1 %v3276_v25  ;;  %2423 = vmatprep.subr.bf16.mxu0 %v3279_v26  ;;  %v3352_v24 = vld [vmem:[#allocation10 + $0x240] ss:$28 sps:$4 sm:$0xff]   ;;  %v3360_v26 = vld [vmem:[#allocation10 + $0x20c] ss:$28 sps:$4 sm:$0xff]  }
 0x23d   :  { %v3355_v25 = vld [vmem:[#allocation10 + $0x5c0] ss:$28 sps:$4 sm:$0xff]  }
 0x23e   :  { %2327 = vmatmul.mubr.bf16.vlgmr.msra.gmra.mxu1 %v3655_v15  ;;  %2370 = vmatmul.mubr.bf16.vlgmr.msra.gmra.mxu0 %v3657_v16 }
 0x23f   :  { %2381 = vmatpush1.bf16.msra.mxu1 %v3274_v27  ;;  %2412 = vmatprep.mubr.bf16.mxu1 %v3651_v11  ;;  %v3363_v27 = vld [vmem:[#allocation10 + $0x58c] ss:$28 sps:$4 sm:$0xff]  }
 0x240   :  { %2424 = vmatpush1.bf16.msra.mxu0 %v3277_v28  ;;  %2455 = vmatprep.mubr.bf16.mxu0 %v3653_v12  ;;  %v3358_v28 = vld [vmem:[#allocation10 + $0x208] ss:$28 sps:$4 sm:$0xff]  }
 0x241   :  { %2382 = vmatprep.subr.bf16.mxu1 %v3282_v29  ;;  %2425 = vmatprep.subr.bf16.mxu0 %v3285_v30  ;;  %v3361_v29 = vld [vmem:[#allocation10 + $0x588] ss:$28 sps:$4 sm:$0xff]   ;;  %v3366_v30 = vld [vmem:[#allocation10 + $0x1d4] ss:$28 sps:$4 sm:$0xff]  }
 0x243   :  { %2383 = vmatpush1.bf16.msra.mxu1 %v3280_v31  ;;  %v3369_v31 = vld [vmem:[#allocation10 + $0x554] ss:$28 sps:$4 sm:$0xff]  }
 0x244   :  { %2426 = vmatpush1.bf16.msra.mxu0 %v3283_v32  ;;  %2384 = vmatprep.subr.bf16.mxu1 %v3288_v33  ;;  %v3364_v32 = vld [vmem:[#allocation10 + $0x1d0] ss:$28 sps:$4 sm:$0xff]  }
 0x245   :  { %2427 = vmatprep.subr.bf16.mxu0 %v3291_v34  ;;  %v3367_v33 = vld [vmem:[#allocation10 + $0x550] ss:$28 sps:$4 sm:$0xff]   ;;  %v3370_v34 = vld [vmem:[#allocation10 + $0x360] ss:$28 sps:$4 sm:$0xff]  }
 0x247   :  { %2385 = vmatpush1.bf16.msra.mxu1 %v3286_v35  ;;  %v3371_v35 = vld [vmem:[#allocation10 + $0x6e0] ss:$28 sps:$4 sm:$0xff]  }
 0x248   :  { %2428 = vmatpush1.bf16.msra.mxu0 %v3289_v36  ;;  %2386 = vmatprep.subr.bf16.mxu1 %v3294_v37  ;;  %v3372_v36 = vld [vmem:[#allocation10 + $0x1a0] ss:$28 sps:$4 sm:$0xff]  }
 0x249   :  { %2429 = vmatprep.subr.bf16.mxu0 %v3297_v38  ;;  %v3373_v37 = vld [vmem:[#allocation10 + $0x520] ss:$28 sps:$4 sm:$0xff]   ;;  %v3374_v38 = vld [vmem:[#allocation10 + $0x328] ss:$28 sps:$4 sm:$0xff]  }
 0x24b   :  { %2387 = vmatpush1.bf16.msra.mxu1 %v3292_v39  ;;  %v3375_v39 = vld [vmem:[#allocation10 + $0x6a8] ss:$28 sps:$4 sm:$0xff]  }
 0x24c   :  { %2430 = vmatpush1.bf16.msra.mxu0 %v3295_v40  ;;  %2388 = vmatprep.subr.bf16.mxu1 %v3300_v41  ;;  %v3376_v40 = vld [vmem:[#allocation10 + $0x168] ss:$28 sps:$4 sm:$0xff]  }
 0x24d   :  { %2431 = vmatprep.subr.bf16.mxu0 %v3303_v42  ;;  %v3377_v41 = vld [vmem:[#allocation10 + $0x4e8] ss:$28 sps:$4 sm:$0xff]   ;;  %v3378_v42 = vld [vmem:[#allocation10 + $0x2f0] ss:$28 sps:$4 sm:$0xff]  }
 0x24f   :  { %2389 = vmatpush1.bf16.msra.mxu1 %v3298_v43  ;;  %v3379_v43 = vld [vmem:[#allocation10 + $0x670] ss:$28 sps:$4 sm:$0xff]  }
 0x250   :  { %2432 = vmatpush1.bf16.msra.mxu0 %v3301_v46  ;;  %2390 = vmatprep.subr.bf16.mxu1 %v3306_v47  ;;  %v3380_v46 = vld [vmem:[#allocation10 + $0x130] ss:$28 sps:$4 sm:$0xff]  }
 0x251   :  { %2433 = vmatprep.subr.bf16.mxu0 %v3309_v48  ;;  %v3381_v47 = vld [vmem:[#allocation10 + $0x4b0] ss:$28 sps:$4 sm:$0xff]   ;;  %v3382_v48 = vld [vmem:[#allocation10 + $0x2b8] ss:$28 sps:$4 sm:$0xff]  }
 0x253   :  { %2391 = vmatpush1.bf16.msra.mxu1 %v3304_v49  ;;  %v3383_v49 = vld [vmem:[#allocation10 + $0x638] ss:$28 sps:$4 sm:$0xff]  }
 0x254   :  { %2434 = vmatpush1.bf16.msra.mxu0 %v3307_v50  ;;  %2392 = vmatprep.subr.bf16.mxu1 %v3312_v51  ;;  %v3384_v50 = vld [vmem:[#allocation10 + $0xf8] ss:$28 sps:$4 sm:$0xff]   ;;  %v3386_v51 = vld [vmem:[#allocation10 + $0x280] ss:$28 sps:$4 sm:$0xff]  }
 0x255   :  { %2435 = vmatprep.subr.bf16.mxu0 %v3315_v52  ;;  %v3387_v52 = vld [vmem:[#allocation10 + $0x600] ss:$28 sps:$4 sm:$0xff]  }
 0x257   :  { %2393 = vmatpush1.bf16.msra.mxu1 %v3310_v53  ;;  %v3389_v53 = vld [vmem:[#allocation10 + $0x440] ss:$28 sps:$4 sm:$0xff]  }
 0x258   :  { %2436 = vmatpush1.bf16.msra.mxu0 %v3313_v54  ;;  %2394 = vmatprep.subr.bf16.mxu1 %v3318_v55  ;;  %v3390_v54 = vld [vmem:[#allocation10 + $0x248] ss:$28 sps:$4 sm:$0xff]  }
 0x259   :  { %2437 = vmatprep.subr.bf16.mxu0 %v3321_v56  ;;  %v3391_v55 = vld [vmem:[#allocation10 + $0x5c8] ss:$28 sps:$4 sm:$0xff]  }
 0x25a   :  { %v3392_v56 = vld [vmem:[#allocation10 + $0x88] ss:$28 sps:$4 sm:$0xff]  }
 0x25b   :  { %2395 = vmatpush1.bf16.msra.mxu1 %v3316_v57  ;;  %v3393_v57 = vld [vmem:[#allocation10 + $0x408] ss:$28 sps:$4 sm:$0xff]  }
 0x25c   :  { %2438 = vmatpush1.bf16.msra.mxu0 %v3319_v58  ;;  %2396 = vmatprep.subr.bf16.mxu1 %v3324_v59  ;;  %v3394_v58 = vld [vmem:[#allocation10 + $0x210] ss:$28 sps:$4 sm:$0xff]  }
 0x25d   :  { %2439 = vmatprep.subr.bf16.mxu0 %v3327_v60  ;;  %v3395_v59 = vld [vmem:[#allocation10 + $0x590] ss:$28 sps:$4 sm:$0xff]  }
 0x25e   :  { %v3396_v60 = vld [vmem:[#allocation10 + $0x50] ss:$28 sps:$4 sm:$0xff]  }
 0x25f   :  { %2397 = vmatpush2.bf16.msra.mxu1 %v3322_v61  ;;  %v3397_v61 = vld [vmem:[#allocation10 + $0x3d0] ss:$28 sps:$4 sm:$0xff]  }
 0x260   :  { %2440 = vmatpush2.bf16.msra.mxu0 %v3325_v62  ;;  %2398 = vmatprep.subr.bf16.mxu1 %v3330_v63  ;;  %v3398_v62 = vld [vmem:[#allocation10 + $0x1d8] ss:$28 sps:$4 sm:$0xff]  }
 0x261   :  { %2441 = vmatprep.subr.bf16.mxu0 %v3333_v0  ;;  %v3399_v63 = vld [vmem:[#allocation10 + $0x558] ss:$28 sps:$4 sm:$0xff]  }
 0x262   :  { %v3400_v0 = vld [vmem:[#allocation10 + $0x18] ss:$28 sps:$4 sm:$0xff]  }
 0x263   :  { %2399 = vmatpush2.bf16.msra.mxu1 %v3328_v1  ;;  %v3401_v1 = vld [vmem:[#allocation10 + $0x398] ss:$28 sps:$4 sm:$0xff]  }
 0x264   :  { %2442 = vmatpush2.bf16.msra.mxu0 %v3331_v2  ;;  %2400 = vmatprep.subr.bf16.mxu1 %v3336_v3  ;;  %v3678_v2 = vld [vmem:[%s3705_s6] sm:$0xff]  ;;  %s3572_s6 = smov [#allocation11]  }
 0x265   :  { %2443 = vmatprep.subr.bf16.mxu0 %v3339_v4  ;;  %v1024_v3 = vrot.slane %v3678_v2, %v3636_v23  ;;  %v1028_v4 = vrot.slane %v3678_v2, %v3633_v22  ;;  %s2581_s9 = sshll.u32 %s3572_s6, 4  ;;  %s2582_s9 = int_to_ptr.vmem [resolvable:$true] %s2581_s9 }
 0x266   :  { %s3530_s10 = scalar_lea.vmem %s2582_s9, 1792  ;;  %p3535_p12 = scmp.lt.s32.totalorder %s2582_s9, %s2582_s9 }
 0x267   :  { %2401 = vmatpush2.bf16.msra.mxu1 %v3334_v5  ;;  %p3531_p11 = scmp.ne.s32.totalorder %s2582_s9, %s3530_s10  ;;  %p3536_p13 = scmp.lt.s32.totalorder %s3530_s10, %s3530_s10 }
 0x268   :  { %2444 = vmatpush2.bf16.msra.mxu0 %v3337_v6  ;;  %2402 = vmatprep.subr.bf16.mxu1 %v3342_v7 }
 0x269   :  { %2445 = vmatprep.subr.bf16.mxu0 %v3345_v8  ;;  %p3537_p0 = por %p3536_p13, %p3535_p12 }
 0x26b   :  { %2403 = vmatpush2.bf16.msra.mxu1 %v3340_v9  ;;  %p3538_p1 = pnand %p3537_p0, %p3531_p11 }
 0x26c   :  { %2446 = vmatpush2.bf16.msra.mxu0 %v3343_v10  ;;  %2404 = vmatprep.subr.bf16.mxu1 %v3348_v13 }
 0x26d   :  { %2447 = vmatprep.subr.bf16.mxu0 %v3351_v14 }
 0x26f   :  { %2405 = vmatpush2.bf16.msra.mxu1 %v3346_v17 }
 0x270   :  { %2448 = vmatpush2.bf16.msra.mxu0 %v3349_v18  ;;  %2406 = vmatprep.subr.bf16.mxu1 %v3354_v19 }
 0x271   :  { %2449 = vmatprep.subr.bf16.mxu0 %v3357_v20 }
 0x273   :  { %2407 = vmatpush2.bf16.msra.mxu1 %v3352_v24 }
 0x274   :  { %2450 = vmatpush2.bf16.msra.mxu0 %v3355_v25  ;;  %2408 = vmatprep.subr.bf16.mxu1 %v3360_v26 }
 0x275   :  { %2451 = vmatprep.subr.bf16.mxu0 %v3363_v27 }
 0x277   :  { %2409 = vmatpush2.bf16.msra.mxu1 %v3358_v28  ;;  %v1032_v28 = vrot.slane %v3678_v2, %v335_v45 }
 0x278   :  { %2452 = vmatpush2.bf16.msra.mxu0 %v3361_v29  ;;  %2410 = vmatprep.subr.bf16.mxu1 %v3366_v30  ;;  %v1036_v29 = vrot.slane %v3678_v2, %v339_v44 }
 0x279   :  { %2453 = vmatprep.subr.bf16.mxu0 %v3369_v31 }
 0x27b   :  { %2411 = vmatpush2.bf16.msra.mxu1 %v3364_v32 }
 0x27c   :  { %2454 = vmatpush2.bf16.msra.mxu0 %v3367_v33  ;;  %2900 = vmatprep.subr.bf16.mxu1 %v3370_v34 }
 0x27d   :  { %2922 = vmatprep.subr.bf16.mxu0 %v3371_v35 }
 0x27e   :  { %2413 = vmatmul.mubr.bf16.vlgmr.msra.gmra.mxu1 %v3655_v15 }
 0x27f   :  { %2456 = vmatmul.mubr.bf16.vlgmr.msra.gmra.mxu0 %v3657_v16  ;;  %2901 = vmatpush3.bf16.msra.mxu1 %v3372_v36 }
 0x280   :  { %2498 = vmatprep.mubr.bf16.mxu1 %v3651_v11  ;;  %2923 = vmatpush3.bf16.msra.mxu0 %v3373_v37  ;;  %v3385_v11 = vld [vmem:[#allocation10 + $0x478] ss:$28 sps:$4 sm:$0xff]  }
 0x281   :  { %2539 = vmatprep.mubr.bf16.mxu0 %v3653_v12  ;;  %2902 = vmatprep.subr.bf16.mxu1 %v3374_v38  ;;  %v3388_v12 = vld [vmem:[#allocation10 + $0xc0] ss:$28 sps:$4 sm:$0xff]  }
 0x282   :  { %2924 = vmatprep.subr.bf16.mxu0 %v3375_v39 }
 0x283   :  { %2903 = vmatpush3.bf16.msra.mxu1 %v3376_v40 }
 0x284   :  { %2925 = vmatpush3.bf16.msra.mxu0 %v3377_v41  ;;  %2904 = vmatprep.subr.bf16.mxu1 %v3378_v42 }
 0x285   :  { %2926 = vmatprep.subr.bf16.mxu0 %v3379_v43 }
 0x287   :  { %2905 = vmatpush3.bf16.msra.mxu1 %v3380_v46 }
 0x288   :  { %2927 = vmatpush3.bf16.msra.mxu0 %v3381_v47  ;;  %2906 = vmatprep.subr.bf16.mxu1 %v3382_v48 }
 0x289   :  { %2928 = vmatprep.subr.bf16.mxu0 %v3383_v49 }
 0x28b   :  { %2907 = vmatpush3.bf16.msra.mxu1 %v3384_v50  ;;  %v1039_v50 = vsub.s32 4, %v3630_v21 }
 0x28c   :  { %2929 = vmatpush3.bf16.msra.mxu0 %v3385_v11  ;;  %2908 = vmatprep.subr.bf16.mxu1 %v3386_v51  ;;  %v1043_v11 = vsub.s32 5, %v3630_v21 }
 0x28d   :  { %2930 = vmatprep.subr.bf16.mxu0 %v3387_v52  ;;  %v1040_v51 = vrot.slane %v3678_v2, %v1039_v50 }
 0x28e   :  { %v1044_v52 = vrot.slane %v3678_v2, %v1043_v11 }
 0x28f   :  { %2909 = vmatpush3.bf16.msra.mxu1 %v3388_v12 }
 0x290   :  { %2931 = vmatpush3.bf16.msra.mxu0 %v3389_v53  ;;  %2910 = vmatprep.subr.bf16.mxu1 %v3390_v54 }
 0x291   :  { %2932 = vmatprep.subr.bf16.mxu0 %v3391_v55 }
 0x293   :  { %2911 = vmatpush3.bf16.msra.mxu1 %v3392_v56 }
 0x294   :  { %2933 = vmatpush3.bf16.msra.mxu0 %v3393_v57  ;;  %2912 = vmatprep.subr.bf16.mxu1 %v3394_v58 }
 0x295   :  { %2934 = vmatprep.subr.bf16.mxu0 %v3395_v59 }
 0x297   :  { %2913 = vmatpush3.bf16.msra.mxu1 %v3396_v60 }
 0x298   :  { %2935 = vmatpush3.bf16.msra.mxu0 %v3397_v61  ;;  %2914 = vmatprep.subr.bf16.mxu1 %v3398_v62 }
 0x299   :  { %2936 = vmatprep.subr.bf16.mxu0 %v3399_v63 }
 0x29b   :  { %2915 = vmatpush3.bf16.msra.mxu1 %v3400_v0 }
 0x29c   :  { %2937 = vmatpush3.bf16.msra.mxu0 %v3401_v1 }
 0x29e   :  { %2499 = vmatmul.mubr.bf16.vlgmr.msra.gmra.mxu1 %v3655_v15 }
 0x29f   :  { %2540 = vmatmul.mubr.bf16.vlgmr.msra.gmra.mxu0 %v3657_v16 }
 0x2be   :  { %v2242_v5 = vpop.f32.mrf.mxu1  ;;  %v2285_v6 = vpop.f32.mrf.mxu0 }
 0x2bf   :  { %v2243_v7 = vadd.f32 %v2242_v5, %v1024_v3 }
 0x2c0   :  { %v2244_v8 = vpop.f32.mrf.mxu1  ;;  %v2287_v9 = vpop.f32.mrf.mxu0 }
 0x2c1   :  { %v2286_v10 = vadd.f32 %v2285_v6, %v2243_v7  ;;  %v2245_v15 = vadd.f32 %v2244_v8, %v1028_v4 }
 0x2c2   :  { %v2246_v13 = vpop.f32.mrf.mxu1  ;;  %v2289_v16 = vpop.f32.mrf.mxu0 }
 0x2c3   :  { %3402 = vtanh.f32 %v2286_v10  ;;  %v2288_v14 = vadd.f32 %v2287_v9, %v2245_v15  ;;  %v2247_v17 = vadd.f32 %v2246_v13, %v1024_v3  ;;  %v1047_v9 = vsub.s32 6, %v3630_v21 }
 0x2c4   :  { %v2248_v18 = vpop.f32.mrf.mxu1  ;;  %v2291_v23 = vpop.f32.mrf.mxu0 }
 0x2c5   :  { %3404 = vtanh.f32 %v2288_v14  ;;  %v2290_v19 = vadd.f32 %v2289_v16, %v2247_v17  ;;  %v2249_v20 = vadd.f32 %v2248_v18, %v1028_v4  ;;  %v1048_v13 = vrot.slane %v3678_v2, %v1047_v9 }
 0x2c7   :  { %3406 = vtanh.f32 %v2290_v19  ;;  %v2292_v24 = vadd.f32 %v2291_v23, %v2249_v20 }
 0x2c9   :  { %3408 = vtanh.f32 %v2292_v24 }
 0x2d0   :  { %v3403_v22 = vpop.eup %3402 }
 0x2d1   :  { %2562 = vst [vmem:[#allocation11] sm:$0xff] %v3403_v22 }
 0x2d2   :  { %v3405_v25 = vpop.eup %3404 }
 0x2d3   :  { %2563 = vst [vmem:[#allocation11 + $0x8] sm:$0xff] %v3405_v25 }
 0x2d4   :  { %v3407_v26 = vpop.eup %3406 }
 0x2d5   :  { %2569 = vst [vmem:[#allocation11 + $0x38] sm:$0xff] %v3407_v26 }
 0x2d6   :  { %v3409_v27 = vpop.eup %3408 }
 0x2d7   :  { %2570 = vst [vmem:[#allocation11 + $0x40] sm:$0xff] %v3409_v27 }
 0x2fe   :  { %v2328_v30 = vpop.f32.mrf.mxu1  ;;  %v2371_v31 = vpop.f32.mrf.mxu0 }
 0x2ff   :  { %v2329_v32 = vadd.f32 %v2328_v30, %v1032_v28 }
 0x300   :  { %v2330_v33 = vpop.f32.mrf.mxu1  ;;  %v2373_v34 = vpop.f32.mrf.mxu0 }
 0x301   :  { %v2372_v35 = vadd.f32 %v2371_v31, %v2329_v32  ;;  %v2331_v36 = vadd.f32 %v2330_v33, %v1036_v29 }
 0x302   :  { %v2332_v37 = vpop.f32.mrf.mxu1  ;;  %v2375_v38 = vpop.f32.mrf.mxu0 }
 0x303   :  { %3410 = vtanh.f32 %v2372_v35  ;;  %v2374_v39 = vadd.f32 %v2373_v34, %v2331_v36  ;;  %v2333_v40 = vadd.f32 %v2332_v37, %v1032_v28 }
 0x304   :  { %v2334_v41 = vpop.f32.mrf.mxu1  ;;  %v2377_v43 = vpop.f32.mrf.mxu0 }
 0x305   :  { %3412 = vtanh.f32 %v2374_v39  ;;  %v2376_v42 = vadd.f32 %v2375_v38, %v2333_v40  ;;  %v2335_v45 = vadd.f32 %v2334_v41, %v1036_v29 }
 0x307   :  { %3414 = vtanh.f32 %v2376_v42  ;;  %v2378_v46 = vadd.f32 %v2377_v43, %v2335_v45 }
 0x309   :  { %3416 = vtanh.f32 %v2378_v46 }
 0x310   :  { %v3411_v44 = vpop.eup %3410 }
 0x311   :  { %2564 = vst [vmem:[#allocation11 + $0x10] sm:$0xff] %v3411_v44 }
 0x312   :  { %v3413_v47 = vpop.eup %3412 }
 0x313   :  { %2565 = vst [vmem:[#allocation11 + $0x18] sm:$0xff] %v3413_v47 }
 0x314   :  { %v3415_v48 = vpop.eup %3414 }
 0x315   :  { %2571 = vst [vmem:[#allocation11 + $0x48] sm:$0xff] %v3415_v48 }
 0x316   :  { %v3417_v49 = vpop.eup %3416 }
 0x317   :  { %2572 = vst [vmem:[#allocation11 + $0x50] sm:$0xff] %v3417_v49 }
 0x33e   :  { %v2414_v12 = vpop.f32.mrf.mxu1 }
 0x33f   :  { %v2415_v53 = vadd.f32 %v2414_v12, %v1040_v51  ;;  %v2457_v54 = vpop.f32.mrf.mxu0 }
 0x340   :  { %v2416_v55 = vpop.f32.mrf.mxu1 }
 0x341   :  { %v2458_v56 = vadd.f32 %v2457_v54, %v2415_v53  ;;  %v2417_v57 = vadd.f32 %v2416_v55, %v1044_v52  ;;  %v2459_v58 = vpop.f32.mrf.mxu0 }
 0x342   :  { %v2418_v59 = vpop.f32.mrf.mxu1 }
 0x343   :  { %3418 = vtanh.f32 %v2458_v56  ;;  %v2460_v60 = vadd.f32 %v2459_v58, %v2417_v57  ;;  %v2419_v61 = vadd.f32 %v2418_v59, %v1040_v51  ;;  %v2461_v62 = vpop.f32.mrf.mxu0 }
 0x344   :  { %v2420_v63 = vpop.f32.mrf.mxu1 }
 0x345   :  { %3420 = vtanh.f32 %v2460_v60  ;;  %v2462_v0 = vadd.f32 %v2461_v62, %v2419_v61  ;;  %v2421_v1 = vadd.f32 %v2420_v63, %v1044_v52  ;;  %v2463_v3 = vpop.f32.mrf.mxu0 }
 0x347   :  { %3422 = vtanh.f32 %v2462_v0  ;;  %v2464_v4 = vadd.f32 %v2463_v3, %v2421_v1 }
 0x349   :  { %3424 = vtanh.f32 %v2464_v4 }
 0x350   :  { %v3419_v5 = vpop.eup %3418 }
 0x351   :  { %2566 = vst [vmem:[#allocation11 + $0x20] sm:$0xff] %v3419_v5 }
 0x352   :  { %v3421_v6 = vpop.eup %3420 }
 0x353   :  { %2567 = vst [vmem:[#allocation11 + $0x28] sm:$0xff] %v3421_v6 }
 0x354   :  { %v3423_v7 = vpop.eup %3422 }
 0x355   :  { %2573 = vst [vmem:[#allocation11 + $0x58] sm:$0xff] %v3423_v7 }
 0x356   :  { %v3425_v8 = vpop.eup %3424 }
 0x357   :  { %2574 = vst [vmem:[#allocation11 + $0x60] sm:$0xff] %v3425_v8 }
 0x35e   :  { %v2916_v10 = vpop.f32.mrf.mxu1 }
 0x35f   :  { %v2938_v15 = vpop.f32.mrf.mxu0 }
 0x360   :  { %v2917_v16 = vpop.f32.mrf.mxu1 }
 0x361   :  { %v2918_v14 = vadd.f32 %v2917_v16, %v2916_v10  ;;  %v2939_v17 = vpop.f32.mrf.mxu0 }
 0x362   :  { %v2919_v18 = vpop.f32.mrf.mxu1  ;;  %v2940_v20 = vadd.f32 %v2939_v17, %v2938_v15 }
 0x363   :  { %v2501_v19 = vadd.f32 %v2918_v14, %v1048_v13  ;;  %v2941_v23 = vpop.f32.mrf.mxu0 }
 0x364   :  { %v2920_v24 = vpop.f32.mrf.mxu1 }
 0x365   :  { %v2542_v22 = vadd.f32 %v2940_v20, %v2501_v19  ;;  %v2921_v25 = vadd.f32 %v2920_v24, %v2919_v18  ;;  %v2942_v26 = vpop.f32.mrf.mxu0 }
 0x366   :  { %v2943_v28 = vadd.f32 %v2942_v26, %v2941_v23 }
 0x367   :  { %3426 = vtanh.f32 %v2542_v22  ;;  %v2504_v27 = vadd.f32 %v2921_v25, %v1048_v13 }
 0x369   :  { %v2545_v29 = vadd.f32 %v2943_v28, %v2504_v27 }
 0x36b   :  { %3428 = vtanh.f32 %v2545_v29 }
 0x374   :  { %v3427_v21 = vpop.eup %3426 }
 0x375   :  { %2568 = vst [vmem:[#allocation11 + $0x30] sm:$0xff] %v3427_v21 }
 0x378   :  { %v3429_v2 = vpop.eup %3428 }
 0x379   :  { %2575 = vst [vmem:[#allocation11 + $0x68] sm:$0xff] %v3429_v2 }
 0x37a   :  { %3541 = shalt.err (!%p3538_p1)
}
 0x37b   :  { %s3573_s11 = smov 896   ;;  %s3574_s12 = smov 56  }
 0x37c   :  { %2587 = dma.vmem_to_hbm [thread:$0]  %s2582_s9, 1792, %s3706_s7, [#allocation4], %s3573_s11, %s3573_s11, %s3574_s12  }
 0x37d   :  { %3556 = dma.done.wait [#allocation4], 1792  }
 0x37e   :  { %3557 = vsyncadd [#allocation4], 4294965504 }
 0x37f   :  { %2591 = vsyncpa [#allocation3], 1 }
 0x380   :  { %2592 = vsyncpa [#allocation6], 1 }
 0x381   :  { %2593 = vsyncpa [#allocation9], 1 }
 0x382   :  { %2594 = vsyncpa [#allocation4], 1 }

</bundles_post_ra>
